<compile_context>
chip_gen: v5e
topology: v5e:2x2
jax: 0.10.0
libtpu: 0.0.40
codegen_flags: <defaults>
</compile_context>

<pallas_src>
import jax
import jax.numpy as jnp
from jax.experimental import pallas as pl
from jax.experimental.pallas import tpu as pltpu

KS = 3
STRIDE = 1
PADDING = 1
N_PTS = KS * KS


# ----------------------------- Pallas kernels ------------------------------

def _pconv_matmul_kernel(a_ref, w_ref, b_ref, o_ref):
    # offset^T tile = W (2N, K) @ patches^T (K, TM) + bias; lane-dense output.
    acc = jnp.dot(w_ref[...], a_ref[...], preferred_element_type=jnp.float32)
    o_ref[...] = (acc + b_ref[...]).astype(o_ref.dtype)


def pconv_matmul(patches_t, w_mat, bias_col, tm):
    k, mp = patches_t.shape
    co = w_mat.shape[0]
    return pl.pallas_call(
        _pconv_matmul_kernel,
        out_shape=jax.ShapeDtypeStruct((co, mp), jnp.float32),
        grid_spec=pltpu.PrefetchScalarGridSpec(
            num_scalar_prefetch=0,
            grid=(mp // tm,),
            in_specs=[
                pl.BlockSpec((k, tm), lambda i: (0, i)),
                pl.BlockSpec((co, k), lambda i: (0, 0)),
                pl.BlockSpec((co, 1), lambda i: (0, 0)),
            ],
            out_specs=pl.BlockSpec((co, tm), lambda i: (0, i)),
        ),
        compiler_params=pltpu.CompilerParams(dimension_semantics=("parallel",)),
    )(patches_t, w_mat, bias_col)


def _depth_weight_kernel(dq_ref, g_ref, d_ref, dw_ref, m_ref):
    # bilinear-combined depth sample, depth difference, exp re-weighting.
    d_off = (g_ref[0] * dq_ref[0] + g_ref[1] * dq_ref[1] +
             g_ref[2] * dq_ref[2] + g_ref[3] * dq_ref[3])        # (N, TM)
    diff = jnp.abs(d_ref[...] - d_off)                           # (1,TM) broadcasts
    e = jnp.exp(-diff)                                           # single EUP exp
    m_ref[...] = e                                               # modulation mask
    e2 = e * e
    dw_ref[...] = e2 * e2 + 0.25                                 # exp(-4*diff)+0.25


def depth_weight(dq_stack, g_stack, depth_row, tm):
    _, n, mp = dq_stack.shape
    spec_s = pl.BlockSpec((4, n, tm), lambda i: (0, 0, i))
    spec_d = pl.BlockSpec((1, tm), lambda i: (0, i))
    spec_o = pl.BlockSpec((n, tm), lambda i: (0, i))
    return pl.pallas_call(
        _depth_weight_kernel,
        out_shape=(jax.ShapeDtypeStruct((n, mp), jnp.float32),
                   jax.ShapeDtypeStruct((n, mp), jnp.float32)),
        grid_spec=pltpu.PrefetchScalarGridSpec(
            num_scalar_prefetch=0,
            grid=(mp // tm,),
            in_specs=[spec_s, spec_s, spec_d],
            out_specs=[spec_o, spec_o],
        ),
        compiler_params=pltpu.CompilerParams(dimension_semantics=("parallel",)),
    )(dq_stack, g_stack, depth_row)


def _dcn_conv_kernel(xq_ref, g_ref, m_ref, bmat_ref, w_ref, o_ref):
    # Bilinear combine + modulation fused with the final ks*ks/stride-ks conv
    # expressed as one matmul over (inc*ks*ks).  g/m arrive per-point (N rows)
    # and are broadcast over channels on-chip via a constant 0/1 matmul, so the
    # channel-broadcast copies never touch HBM.
    mm = m_ref[...]                                              # (N, TM) f32
    bmat = bmat_ref[...]                                         # (C*N, N) 0/1 f32

    def bcast(k):  # (C*N, N) @ (N, TM) -> channel-broadcast (C*N, TM), exact
        return jnp.dot(bmat, g_ref[k] * mm, preferred_element_type=jnp.float32)

    x_off = (bcast(0) * xq_ref[0].astype(jnp.float32) +
             bcast(1) * xq_ref[1].astype(jnp.float32) +
             bcast(2) * xq_ref[2].astype(jnp.float32) +
             bcast(3) * xq_ref[3].astype(jnp.float32))           # (C*N, TM) f32
    o_ref[...] = jnp.dot(w_ref[...], x_off.astype(jnp.bfloat16),
                         preferred_element_type=jnp.float32).astype(o_ref.dtype)


def dcn_conv(xq_stack, g_stack, m_row, bmat, w_bf16, tm):
    _, cn, mp = xq_stack.shape
    n = g_stack.shape[1]
    outc = w_bf16.shape[0]
    return pl.pallas_call(
        _dcn_conv_kernel,
        out_shape=jax.ShapeDtypeStruct((outc, mp), jnp.float32),
        grid_spec=pltpu.PrefetchScalarGridSpec(
            num_scalar_prefetch=0,
            grid=(mp // tm,),
            in_specs=[
                pl.BlockSpec((4, cn, tm), lambda i: (0, 0, i)),   # bf16 corners
                pl.BlockSpec((4, n, tm), lambda i: (0, 0, i)),    # g, per-point
                pl.BlockSpec((n, tm), lambda i: (0, i)),          # modulation
                pl.BlockSpec((cn, n), lambda i: (0, 0)),          # 0/1 bcast mat
                pl.BlockSpec((outc, cn), lambda i: (0, 0)),       # conv weight
            ],
            out_specs=pl.BlockSpec((outc, tm), lambda i: (0, i)),
        ),
        compiler_params=pltpu.CompilerParams(
            dimension_semantics=("parallel",),
            vmem_limit_bytes=32 * 1024 * 1024),
    )(xq_stack, g_stack, m_row, bmat, w_bf16)


# ------------------------------ JAX glue ------------------------------------

def _round_up(x, mult):
    return (x + mult - 1) // mult * mult


def _choose_tm(mp, cn):
    # Largest lane tile that keeps a >=2 step grid (both v7x TensorCores busy)
    # while the double-buffered corner working set stays well under the v7x
    # scoped-VMEM budget.
    budget = 16 * 1024 * 1024
    for tm in (2048, 1024, 512, 256, 128):
        if mp % tm != 0 or mp // tm < 2:
            continue
        if 4 * cn * tm * 2 * 2 <= budget:        # 4 corners, bf16, double-buffered
            return tm
    return 128


def _pad_lanes(a, mp):
    pad = mp - a.shape[-1]
    if pad == 0:
        return a
    return jnp.pad(a, [(0, 0)] * (a.ndim - 1) + [(0, pad)])


def _corner_indices_and_weights(p, h_clamp, w_clamp, n):
    """Clamped corner indices (lt, rb, lb, rt) + bilinear weights, torch order.

    NOTE: mirrors the torch reference exactly, including pass-1's behaviour of
    clamping with the UNpadded bounds while gathering from the padded map.
    """
    px, py = p[..., :n], p[..., n:]
    fx, fy = jnp.floor(px), jnp.floor(py)
    ltx = jnp.clip(fx, 0, h_clamp)
    lty = jnp.clip(fy, 0, w_clamp)
    rbx = jnp.clip(fx + 1.0, 0, h_clamp)
    rby = jnp.clip(fy + 1.0, 0, w_clamp)
    pxc = jnp.clip(px, 0, h_clamp)
    pyc = jnp.clip(py, 0, w_clamp)
    g_lt = (1 + (ltx - pxc)) * (1 + (lty - pyc))
    g_rb = (1 - (rbx - pxc)) * (1 - (rby - pyc))
    g_lb = (1 + (ltx - pxc)) * (1 - (rby - pyc))
    g_rt = (1 - (rbx - pxc)) * (1 + (lty - pyc))
    qx = tuple(a.astype(jnp.int32) for a in (ltx, rbx, ltx, rbx))
    qy = tuple(a.astype(jnp.int32) for a in (lty, rby, rby, lty))
    return qx, qy, (g_lt, g_rb, g_lb, g_rt)


def _gather_corners_t(src_pad, qx, qy, n):
    """Gather the 4 bilinear corners -> (4, c*N, M) transposed slab (c major)."""
    b, c, hp, wp = src_pad.shape
    _, h, w, _ = qx[0].shape
    src_flat = src_pad.reshape(b, c, hp * wp)
    # TODO(synk): data-dependent gather stays in plain JAX (take_along_axis);
    # an in-kernel dynamic/DMA gather would remove this HBM round trip.
    outs = []
    for k in range(4):
        idx = (qx[k] * wp + qy[k]).reshape(b, 1, h * w * n)
        idx = jnp.broadcast_to(idx, (b, c, h * w * n))
        v = jnp.take_along_axis(src_flat, idx, axis=2)
        v = v.reshape(b, c, h * w, n).transpose(1, 3, 0, 2)     # (c, N, b, h*w)
        outs.append(v.reshape(c * n, b * h * w))
    return jnp.stack(outs, axis=0)


def _stack_weights_t(gs, n, m):
    # tuple of 4 arrays (b, h, w, N) -> (4, N, M)
    return jnp.stack([g.transpose(3, 0, 1, 2).reshape(n, m) for g in gs], axis=0)


def deform_conv2d_forward(x, depth, params):
    b, inc, h, w = x.shape
    n = N_PTS
    cn = inc * n
    m = b * h * w
    f32 = jnp.float32
    x = x.astype(f32)
    depth = depth.astype(f32)

    mp = _round_up(m, 128)
    tm = _choose_tm(mp, cn)

    # ---- offset = p_conv(x): 3x3/stride1/pad1 via im2col + Pallas matmul -----
    xp = jnp.pad(x, ((0, 0), (0, 0), (1, 1), (1, 1)))
    pats = [xp[:, :, di:di + h, dj:dj + w] for di in range(3) for dj in range(3)]
    patches = jnp.stack(pats, axis=2)                            # (b, c, 9, h, w)
    patches_t = patches.transpose(1, 2, 0, 3, 4).reshape(inc * 9, m)
    p_wmat = params["p_w"].reshape(2 * n, inc * 9).astype(f32)
    p_bias = params["p_b"].reshape(2 * n, 1).astype(f32)
    off_t = pconv_matmul(_pad_lanes(patches_t, mp), p_wmat, p_bias, tm)[:, :m]
    offset_hw = off_t.reshape(2 * n, b, h, w).transpose(1, 2, 3, 0)   # (b,h,w,2N)

    # ---- p_0 + p_n base sampling grid (channels-last, matching torch permute)
    kr = jnp.arange(-(KS - 1) // 2, (KS - 1) // 2 + 1)
    pnx, pny = jnp.meshgrid(kr, kr, indexing="ij")
    pnx = pnx.reshape(-1).astype(f32)
    pny = pny.reshape(-1).astype(f32)
    ii = jnp.arange(h, dtype=f32) * STRIDE + 1.0
    jj = jnp.arange(w, dtype=f32) * STRIDE + 1.0
    base_x = jnp.broadcast_to(ii[:, None, None] + pnx[None, None, :], (h, w, n))
    base_y = jnp.broadcast_to(jj[None, :, None] + pny[None, None, :], (h, w, n))
    base = jnp.concatenate([base_x, base_y], axis=-1)[None]          # (1,h,w,2N)

    # ---- pass 1: bilinear-sample padded depth, depth re-weighting (Pallas) ---
    p1 = offset_hw + base
    depth_pad = jnp.pad(depth, ((0, 0), (0, 0), (PADDING,) * 2, (PADDING,) * 2))
    qx1, qy1, g1 = _corner_indices_and_weights(p1, h - 1, w - 1, n)
    dq_stack = _pad_lanes(_gather_corners_t(depth_pad, qx1, qy1, n), mp)  # (4,N,MP)
    g1_stack = _pad_lanes(_stack_weights_t(g1, n, m), mp)                 # (4,N,MP)
    depth_row = _pad_lanes(depth[:, 0].reshape(1, m), mp)                 # (1,MP)
    dw_t, mod_t = depth_weight(dq_stack, g1_stack, depth_row, tm)         # (N,MP)x2

    dw_hw = dw_t[:, :m].reshape(n, b, h, w).transpose(1, 2, 3, 0)         # (b,h,w,N)
    offset_hw2 = offset_hw * jnp.concatenate([dw_hw, dw_hw], axis=-1)

    # ---- pass 2: bilinear-sample padded x + modulation + final conv (Pallas) -
    x_pad = jnp.pad(x, ((0, 0), (0, 0), (PADDING,) * 2, (PADDING,) * 2))
    hp, wp = h + 2 * PADDING, w + 2 * PADDING
    p2 = offset_hw2 + base
    qx2, qy2, g2 = _corner_indices_and_weights(p2, hp - 1, wp - 1, n)
    # bf16 corner values halve HBM/VMEM bytes of the 4 dominant streams; all
    # elementwise math stays f32 in-kernel; MXU accumulates in f32.
    xq_stack = _pad_lanes(
        _gather_corners_t(x_pad.astype(jnp.bfloat16), qx2, qy2, n), mp)   # (4,CN,MP)
    g2_stack = _pad_lanes(_stack_weights_t(g2, n, m), mp)                 # (4,N,MP)

    outc = params["c_w"].shape[0]
    bmat = jnp.tile(jnp.eye(n, dtype=f32), (inc, 1))                      # (CN, N)
    # Conv2d(inc, outc, ks, stride=ks, bias=None) on the ks-expanded map is a
    # per-pixel contraction over (inc, ks*ks):
    w_bf16 = params["c_w"].reshape(outc, cn).astype(jnp.bfloat16)         # (outc,CN)
    out_t = dcn_conv(xq_stack, g2_stack, mod_t, bmat, w_bf16, tm)         # (outc,MP)
    return out_t[:, :m].reshape(outc, b, h, w).transpose(1, 0, 2, 3)


# --------------------------------- main --------------------------------------

if __name__ == "__main__":
    key = jax.random.PRNGKey(0)
    kx, kd, kb, kc = jax.random.split(key, 4)
    b, inc, outc, h, w = 2, 4, 8, 16, 16

    x = jax.random.normal(kx, (b, inc, h, w), jnp.float32)
    depth = jax.random.uniform(kd, (b, 1, h, w), jnp.float32, 0.5, 5.0)

    params = {
        # p_conv: nn.init.constant_(weight, 0) per __init__; deterministic bias.
        "p_w": jnp.zeros((2 * N_PTS, inc, 3, 3), jnp.float32),
        "p_b": jax.random.uniform(kb, (2 * N_PTS,), jnp.float32, -1.0, 1.0),
        # final conv: Conv2d(inc, outc, ks, stride=ks, bias=None) -> no bias.
        "c_w": jax.random.normal(kc, (outc, inc, KS, KS), jnp.float32) * 0.1,
    }

    out = jax.jit(deform_conv2d_forward)(x, depth, params)
    out = jax.block_until_ready(out)
    assert out.shape == (b, outc, h, w)
    assert bool(jnp.all(jnp.isfinite(out)))
    print("KERNEL_OK")
</pallas_src>

<mosaic_0001>
module attributes {stable_mosaic.version = 11 : i64} {
  func.func @_pconv_matmul_kernel(%arg0: i32, %arg1: memref<36x256xf32, #tpu.memory_space<vmem>>, %arg2: memref<18x36xf32, #tpu.memory_space<vmem>>, %arg3: memref<18x1xf32, #tpu.memory_space<vmem>>, %arg4: memref<18x256xf32, #tpu.memory_space<vmem>>) attributes {dimension_semantics = [#tpu.dimension_semantics<parallel>], iteration_bounds = array<i64: 2>, scalar_prefetch = 0 : i64, scratch_operands = 0 : i64, tpu.core_type = #tpu.core_type<tc>, window_params = [{transform_indices = @transform_0, window_bounds = array<i64: 36, 256>}, {pipeline_mode = #tpu.pipeline_mode<synchronous>, transform_indices = @transform_1, window_bounds = array<i64: 18, 36>}, {pipeline_mode = #tpu.pipeline_mode<synchronous>, transform_indices = @transform_2, window_bounds = array<i64: 18, 1>}, {transform_indices = @transform_3, window_bounds = array<i64: 18, 256>}]} {
    %c0 = arith.constant 0 : index
    %c0_0 = arith.constant 0 : index
    %0 = vector.load %arg2[%c0, %c0_0] : memref<18x36xf32, #tpu.memory_space<vmem>>, vector<18x36xf32>
    %c0_1 = arith.constant 0 : index
    %c0_2 = arith.constant 0 : index
    %1 = vector.load %arg1[%c0_1, %c0_2] : memref<36x256xf32, #tpu.memory_space<vmem>>, vector<36x256xf32>
    %cst = arith.constant dense<0.000000e+00> : vector<18x256xf32>
    %2 = tpu.matmul %0, %1, %cst {dimension_numbers = #tpu.dot_dimension_numbers<[1], [0], [0], [1], [0, 0, 1, 1], [], []>} : vector<18x36xf32>, vector<36x256xf32>, vector<18x256xf32> -> vector<18x256xf32>
    %c0_3 = arith.constant 0 : index
    %c0_4 = arith.constant 0 : index
    %3 = vector.load %arg3[%c0_3, %c0_4] : memref<18x1xf32, #tpu.memory_space<vmem>>, vector<18x1xf32>
    %4 = vector.broadcast %3 : vector<18x1xf32> to vector<18x256xf32>
    %5 = arith.addf %2, %4 : vector<18x256xf32>
    %c0_5 = arith.constant 0 : index
    %c0_6 = arith.constant 0 : index
    %6 = vector.load %arg4[%c0_5, %c0_6] : memref<18x256xf32, #tpu.memory_space<vmem>>, vector<18x256xf32>
    tpu.vector_store %arg4[%c0_5, %c0_6], %5 {strides = array<i32>} : memref<18x256xf32, #tpu.memory_space<vmem>>, vector<18x256xf32>,
    return
  }
  func.func @transform_0(%arg0: i32) -> (i32, i32) {
    %c0_i32 = arith.constant 0 : i32
    %c0_i32_0 = arith.constant 0 : i32
    return %c0_i32, %arg0 : i32, i32
  }
  func.func @transform_1(%arg0: i32) -> (i32, i32) {
    %c0_i32 = arith.constant 0 : i32
    %c0_i32_0 = arith.constant 0 : i32
    %c0_i32_1 = arith.constant 0 : i32
    return %c0_i32, %c0_i32_0 : i32, i32
  }
  func.func @transform_2(%arg0: i32) -> (i32, i32) {
    %c0_i32 = arith.constant 0 : i32
    %c0_i32_0 = arith.constant 0 : i32
    %c0_i32_1 = arith.constant 0 : i32
    return %c0_i32, %c0_i32_0 : i32, i32
  }
  func.func @transform_3(%arg0: i32) -> (i32, i32) {
    %c0_i32 = arith.constant 0 : i32
    %c0_i32_0 = arith.constant 0 : i32
    return %c0_i32, %arg0 : i32, i32
  }
}

module attributes {stable_mosaic.version = 11 : i64} {
  func.func @_depth_weight_kernel(%arg0: i32, %arg1: memref<4x9x256xf32, #tpu.memory_space<vmem>>, %arg2: memref<4x9x256xf32, #tpu.memory_space<vmem>>, %arg3: memref<1x256xf32, #tpu.memory_space<vmem>>, %arg4: memref<9x256xf32, #tpu.memory_space<vmem>>, %arg5: memref<9x256xf32, #tpu.memory_space<vmem>>) attributes {dimension_semantics = [#tpu.dimension_semantics<parallel>], iteration_bounds = array<i64: 2>, scalar_prefetch = 0 : i64, scratch_operands = 0 : i64, tpu.core_type = #tpu.core_type<tc>, window_params = [{transform_indices = @transform_0, window_bounds = array<i64: 4, 9, 256>}, {transform_indices = @transform_1, window_bounds = array<i64: 4, 9, 256>}, {transform_indices = @transform_2, window_bounds = array<i64: 1, 256>}, {transform_indices = @transform_3, window_bounds = array<i64: 9, 256>}, {transform_indices = @transform_4, window_bounds = array<i64: 9, 256>}]} {
    %c0 = arith.constant 0 : index
    %c0_0 = arith.constant 0 : index
    %c0_1 = arith.constant 0 : index
    %0 = vector.load %arg2[%c0, %c0_0, %c0_1] : memref<4x9x256xf32, #tpu.memory_space<vmem>>, vector<1x9x256xf32>
    %1 = vector.shape_cast %0 : vector<1x9x256xf32> to vector<9x256xf32>
    %c0_2 = arith.constant 0 : index
    %c0_3 = arith.constant 0 : index
    %c0_4 = arith.constant 0 : index
    %2 = vector.load %arg1[%c0_2, %c0_3, %c0_4] : memref<4x9x256xf32, #tpu.memory_space<vmem>>, vector<1x9x256xf32>
    %3 = vector.shape_cast %2 : vector<1x9x256xf32> to vector<9x256xf32>
    %4 = arith.mulf %1, %3 : vector<9x256xf32>
    %c1 = arith.constant 1 : index
    %c0_5 = arith.constant 0 : index
    %c0_6 = arith.constant 0 : index
    %5 = vector.load %arg2[%c1, %c0_5, %c0_6] : memref<4x9x256xf32, #tpu.memory_space<vmem>>, vector<1x9x256xf32>
    %6 = vector.shape_cast %5 : vector<1x9x256xf32> to vector<9x256xf32>
    %c1_7 = arith.constant 1 : index
    %c0_8 = arith.constant 0 : index
    %c0_9 = arith.constant 0 : index
    %7 = vector.load %arg1[%c1_7, %c0_8, %c0_9] : memref<4x9x256xf32, #tpu.memory_space<vmem>>, vector<1x9x256xf32>
    %8 = vector.shape_cast %7 : vector<1x9x256xf32> to vector<9x256xf32>
    %9 = arith.mulf %6, %8 : vector<9x256xf32>
    %10 = arith.addf %4, %9 : vector<9x256xf32>
    %c2 = arith.constant 2 : index
    %c0_10 = arith.constant 0 : index
    %c0_11 = arith.constant 0 : index
    %11 = vector.load %arg2[%c2, %c0_10, %c0_11] : memref<4x9x256xf32, #tpu.memory_space<vmem>>, vector<1x9x256xf32>
    %12 = vector.shape_cast %11 : vector<1x9x256xf32> to vector<9x256xf32>
    %c2_12 = arith.constant 2 : index
    %c0_13 = arith.constant 0 : index
    %c0_14 = arith.constant 0 : index
    %13 = vector.load %arg1[%c2_12, %c0_13, %c0_14] : memref<4x9x256xf32, #tpu.memory_space<vmem>>, vector<1x9x256xf32>
    %14 = vector.shape_cast %13 : vector<1x9x256xf32> to vector<9x256xf32>
    %15 = arith.mulf %12, %14 : vector<9x256xf32>
    %16 = arith.addf %10, %15 : vector<9x256xf32>
    %c3 = arith.constant 3 : index
    %c0_15 = arith.constant 0 : index
    %c0_16 = arith.constant 0 : index
    %17 = vector.load %arg2[%c3, %c0_15, %c0_16] : memref<4x9x256xf32, #tpu.memory_space<vmem>>, vector<1x9x256xf32>
    %18 = vector.shape_cast %17 : vector<1x9x256xf32> to vector<9x256xf32>
    %c3_17 = arith.constant 3 : index
    %c0_18 = arith.constant 0 : index
    %c0_19 = arith.constant 0 : index
    %19 = vector.load %arg1[%c3_17, %c0_18, %c0_19] : memref<4x9x256xf32, #tpu.memory_space<vmem>>, vector<1x9x256xf32>
    %20 = vector.shape_cast %19 : vector<1x9x256xf32> to vector<9x256xf32>
    %21 = arith.mulf %18, %20 : vector<9x256xf32>
    %22 = arith.addf %16, %21 : vector<9x256xf32>
    %c0_20 = arith.constant 0 : index
    %c0_21 = arith.constant 0 : index
    %23 = vector.load %arg3[%c0_20, %c0_21] : memref<1x256xf32, #tpu.memory_space<vmem>>, vector<1x256xf32>
    %24 = vector.broadcast %23 : vector<1x256xf32> to vector<9x256xf32>
    %25 = arith.subf %24, %22 : vector<9x256xf32>
    %26 = math.absf %25 : vector<9x256xf32>
    %cst = arith.constant 0.000000e+00 : f32
    %27 = vector.broadcast %cst : f32 to vector<9x256xf32>
    %28 = arith.subf %27, %26 : vector<9x256xf32>
    %29 = math.exp %28 : vector<9x256xf32>
    %c0_22 = arith.constant 0 : index
    %c0_23 = arith.constant 0 : index
    %30 = vector.load %arg5[%c0_22, %c0_23] : memref<9x256xf32, #tpu.memory_space<vmem>>, vector<9x256xf32>
    tpu.vector_store %arg5[%c0_22, %c0_23], %29 {strides = array<i32>} : memref<9x256xf32, #tpu.memory_space<vmem>>, vector<9x256xf32>,
    %31 = arith.mulf %29, %29 : vector<9x256xf32>
    %32 = arith.mulf %31, %31 : vector<9x256xf32>
    %cst_24 = arith.constant 2.500000e-01 : f32
    %33 = vector.broadcast %cst_24 : f32 to vector<9x256xf32>
    %34 = arith.addf %32, %33 : vector<9x256xf32>
    %c0_25 = arith.constant 0 : index
    %c0_26 = arith.constant 0 : index
    %35 = vector.load %arg4[%c0_25, %c0_26] : memref<9x256xf32, #tpu.memory_space<vmem>>, vector<9x256xf32>
    tpu.vector_store %arg4[%c0_25, %c0_26], %34 {strides = array<i32>} : memref<9x256xf32, #tpu.memory_space<vmem>>, vector<9x256xf32>,
    return
  }
  func.func @transform_0(%arg0: i32) -> (i32, i32, i32) {
    %c0_i32 = arith.constant 0 : i32
    %c0_i32_0 = arith.constant 0 : i32
    %c0_i32_1 = arith.constant 0 : i32
    return %c0_i32, %c0_i32_0, %arg0 : i32, i32, i32
  }
  func.func @transform_1(%arg0: i32) -> (i32, i32, i32) {
    %c0_i32 = arith.constant 0 : i32
    %c0_i32_0 = arith.constant 0 : i32
    %c0_i32_1 = arith.constant 0 : i32
    return %c0_i32, %c0_i32_0, %arg0 : i32, i32, i32
  }
  func.func @transform_2(%arg0: i32) -> (i32, i32) {
    %c0_i32 = arith.constant 0 : i32
    %c0_i32_0 = arith.constant 0 : i32
    return %c0_i32, %arg0 : i32, i32
  }
  func.func @transform_3(%arg0: i32) -> (i32, i32) {
    %c0_i32 = arith.constant 0 : i32
    %c0_i32_0 = arith.constant 0 : i32
    return %c0_i32, %arg0 : i32, i32
  }
  func.func @transform_4(%arg0: i32) -> (i32, i32) {
    %c0_i32 = arith.constant 0 : i32
    %c0_i32_0 = arith.constant 0 : i32
    return %c0_i32, %arg0 : i32, i32
  }
}

module attributes {stable_mosaic.version = 11 : i64} {
  func.func @_dcn_conv_kernel(%arg0: i32, %arg1: memref<4x36x256xbf16, #tpu.memory_space<vmem>>, %arg2: memref<4x9x256xf32, #tpu.memory_space<vmem>>, %arg3: memref<9x256xf32, #tpu.memory_space<vmem>>, %arg4: memref<36x9xf32, #tpu.memory_space<vmem>>, %arg5: memref<8x36xbf16, #tpu.memory_space<vmem>>, %arg6: memref<8x256xf32, #tpu.memory_space<vmem>>) attributes {dimension_semantics = [#tpu.dimension_semantics<parallel>], iteration_bounds = array<i64: 2>, scalar_prefetch = 0 : i64, scratch_operands = 0 : i64, tpu.core_type = #tpu.core_type<tc>, window_params = [{transform_indices = @transform_0, window_bounds = array<i64: 4, 36, 256>}, {transform_indices = @transform_1, window_bounds = array<i64: 4, 9, 256>}, {transform_indices = @transform_2, window_bounds = array<i64: 9, 256>}, {pipeline_mode = #tpu.pipeline_mode<synchronous>, transform_indices = @transform_3, window_bounds = array<i64: 36, 9>}, {pipeline_mode = #tpu.pipeline_mode<synchronous>, transform_indices = @transform_4, window_bounds = array<i64: 8, 36>}, {transform_indices = @transform_5, window_bounds = array<i64: 8, 256>}]} {
    %c0 = arith.constant 0 : index
    %c0_0 = arith.constant 0 : index
    %0 = vector.load %arg3[%c0, %c0_0] : memref<9x256xf32, #tpu.memory_space<vmem>>, vector<9x256xf32>
    %c0_1 = arith.constant 0 : index
    %c0_2 = arith.constant 0 : index
    %1 = vector.load %arg4[%c0_1, %c0_2] : memref<36x9xf32, #tpu.memory_space<vmem>>, vector<36x9xf32>
    %c0_3 = arith.constant 0 : index
    %c0_4 = arith.constant 0 : index
    %c0_5 = arith.constant 0 : index
    %2 = vector.load %arg2[%c0_3, %c0_4, %c0_5] : memref<4x9x256xf32, #tpu.memory_space<vmem>>, vector<1x9x256xf32>
    %3 = vector.shape_cast %2 : vector<1x9x256xf32> to vector<9x256xf32>
    %4 = arith.mulf %3, %0 : vector<9x256xf32>
    %cst = arith.constant dense<0.000000e+00> : vector<36x256xf32>
    %5 = tpu.matmul %1, %4, %cst {dimension_numbers = #tpu.dot_dimension_numbers<[1], [0], [0], [1], [0, 0, 1, 1], [], []>} : vector<36x9xf32>, vector<9x256xf32>, vector<36x256xf32> -> vector<36x256xf32>
    %c0_6 = arith.constant 0 : index
    %c0_7 = arith.constant 0 : index
    %c0_8 = arith.constant 0 : index
    %6 = vector.load %arg1[%c0_6, %c0_7, %c0_8] : memref<4x36x256xbf16, #tpu.memory_space<vmem>>, vector<1x36x256xbf16>
    %7 = vector.shape_cast %6 : vector<1x36x256xbf16> to vector<36x256xbf16>
    %8 = arith.extf %7 : vector<36x256xbf16> to vector<36x256xf32>
    %9 = arith.mulf %5, %8 : vector<36x256xf32>
    %c1 = arith.constant 1 : index
    %c0_9 = arith.constant 0 : index
    %c0_10 = arith.constant 0 : index
    %10 = vector.load %arg2[%c1, %c0_9, %c0_10] : memref<4x9x256xf32, #tpu.memory_space<vmem>>, vector<1x9x256xf32>
    %11 = vector.shape_cast %10 : vector<1x9x256xf32> to vector<9x256xf32>
    %12 = arith.mulf %11, %0 : vector<9x256xf32>
    %cst_11 = arith.constant dense<0.000000e+00> : vector<36x256xf32>
    %13 = tpu.matmul %1, %12, %cst_11 {dimension_numbers = #tpu.dot_dimension_numbers<[1], [0], [0], [1], [0, 0, 1, 1], [], []>} : vector<36x9xf32>, vector<9x256xf32>, vector<36x256xf32> -> vector<36x256xf32>
    %c1_12 = arith.constant 1 : index
    %c0_13 = arith.constant 0 : index
    %c0_14 = arith.constant 0 : index
    %14 = vector.load %arg1[%c1_12, %c0_13, %c0_14] : memref<4x36x256xbf16, #tpu.memory_space<vmem>>, vector<1x36x256xbf16>
    %15 = vector.shape_cast %14 : vector<1x36x256xbf16> to vector<36x256xbf16>
    %16 = arith.extf %15 : vector<36x256xbf16> to vector<36x256xf32>
    %17 = arith.mulf %13, %16 : vector<36x256xf32>
    %18 = arith.addf %9, %17 : vector<36x256xf32>
    %c2 = arith.constant 2 : index
    %c0_15 = arith.constant 0 : index
    %c0_16 = arith.constant 0 : index
    %19 = vector.load %arg2[%c2, %c0_15, %c0_16] : memref<4x9x256xf32, #tpu.memory_space<vmem>>, vector<1x9x256xf32>
    %20 = vector.shape_cast %19 : vector<1x9x256xf32> to vector<9x256xf32>
    %21 = arith.mulf %20, %0 : vector<9x256xf32>
    %cst_17 = arith.constant dense<0.000000e+00> : vector<36x256xf32>
    %22 = tpu.matmul %1, %21, %cst_17 {dimension_numbers = #tpu.dot_dimension_numbers<[1], [0], [0], [1], [0, 0, 1, 1], [], []>} : vector<36x9xf32>, vector<9x256xf32>, vector<36x256xf32> -> vector<36x256xf32>
    %c2_18 = arith.constant 2 : index
    %c0_19 = arith.constant 0 : index
    %c0_20 = arith.constant 0 : index
    %23 = vector.load %arg1[%c2_18, %c0_19, %c0_20] : memref<4x36x256xbf16, #tpu.memory_space<vmem>>, vector<1x36x256xbf16>
    %24 = vector.shape_cast %23 : vector<1x36x256xbf16> to vector<36x256xbf16>
    %25 = arith.extf %24 : vector<36x256xbf16> to vector<36x256xf32>
    %26 = arith.mulf %22, %25 : vector<36x256xf32>
    %27 = arith.addf %18, %26 : vector<36x256xf32>
    %c3 = arith.constant 3 : index
    %c0_21 = arith.constant 0 : index
    %c0_22 = arith.constant 0 : index
    %28 = vector.load %arg2[%c3, %c0_21, %c0_22] : memref<4x9x256xf32, #tpu.memory_space<vmem>>, vector<1x9x256xf32>
    %29 = vector.shape_cast %28 : vector<1x9x256xf32> to vector<9x256xf32>
    %30 = arith.mulf %29, %0 : vector<9x256xf32>
    %cst_23 = arith.constant dense<0.000000e+00> : vector<36x256xf32>
    %31 = tpu.matmul %1, %30, %cst_23 {dimension_numbers = #tpu.dot_dimension_numbers<[1], [0], [0], [1], [0, 0, 1, 1], [], []>} : vector<36x9xf32>, vector<9x256xf32>, vector<36x256xf32> -> vector<36x256xf32>
    %c3_24 = arith.constant 3 : index
    %c0_25 = arith.constant 0 : index
    %c0_26 = arith.constant 0 : index
    %32 = vector.load %arg1[%c3_24, %c0_25, %c0_26] : memref<4x36x256xbf16, #tpu.memory_space<vmem>>, vector<1x36x256xbf16>
    %33 = vector.shape_cast %32 : vector<1x36x256xbf16> to vector<36x256xbf16>
    %34 = arith.extf %33 : vector<36x256xbf16> to vector<36x256xf32>
    %35 = arith.mulf %31, %34 : vector<36x256xf32>
    %36 = arith.addf %27, %35 : vector<36x256xf32>
    %c0_27 = arith.constant 0 : index
    %c0_28 = arith.constant 0 : index
    %37 = vector.load %arg5[%c0_27, %c0_28] : memref<8x36xbf16, #tpu.memory_space<vmem>>, vector<8x36xbf16>
    %38 = arith.truncf %36 : vector<36x256xf32> to vector<36x256xbf16>
    %cst_29 = arith.constant dense<0.000000e+00> : vector<8x256xf32>
    %39 = tpu.matmul %37, %38, %cst_29 {dimension_numbers = #tpu.dot_dimension_numbers<[1], [0], [0], [1], [0, 0, 1, 1], [], []>} : vector<8x36xbf16>, vector<36x256xbf16>, vector<8x256xf32> -> vector<8x256xf32>
    %c0_30 = arith.constant 0 : index
    %c0_31 = arith.constant 0 : index
    %40 = vector.load %arg6[%c0_30, %c0_31] : memref<8x256xf32, #tpu.memory_space<vmem>>, vector<8x256xf32>
    tpu.vector_store %arg6[%c0_30, %c0_31], %39 {strides = array<i32>} : memref<8x256xf32, #tpu.memory_space<vmem>>, vector<8x256xf32>,
    return
  }
  func.func @transform_0(%arg0: i32) -> (i32, i32, i32) {
    %c0_i32 = arith.constant 0 : i32
    %c0_i32_0 = arith.constant 0 : i32
    %c0_i32_1 = arith.constant 0 : i32
    return %c0_i32, %c0_i32_0, %arg0 : i32, i32, i32
  }
  func.func @transform_1(%arg0: i32) -> (i32, i32, i32) {
    %c0_i32 = arith.constant 0 : i32
    %c0_i32_0 = arith.constant 0 : i32
    %c0_i32_1 = arith.constant 0 : i32
    return %c0_i32, %c0_i32_0, %arg0 : i32, i32, i32
  }
  func.func @transform_2(%arg0: i32) -> (i32, i32) {
    %c0_i32 = arith.constant 0 : i32
    %c0_i32_0 = arith.constant 0 : i32
    return %c0_i32, %arg0 : i32, i32
  }
  func.func @transform_3(%arg0: i32) -> (i32, i32) {
    %c0_i32 = arith.constant 0 : i32
    %c0_i32_0 = arith.constant 0 : i32
    %c0_i32_1 = arith.constant 0 : i32
    return %c0_i32, %c0_i32_0 : i32, i32
  }
  func.func @transform_4(%arg0: i32) -> (i32, i32) {
    %c0_i32 = arith.constant 0 : i32
    %c0_i32_0 = arith.constant 0 : i32
    %c0_i32_1 = arith.constant 0 : i32
    return %c0_i32, %c0_i32_0 : i32, i32
  }
  func.func @transform_5(%arg0: i32) -> (i32, i32) {
    %c0_i32 = arith.constant 0 : i32
    %c0_i32_0 = arith.constant 0 : i32
    return %c0_i32, %arg0 : i32, i32
  }
}

</mosaic_0001>

<bundles_post_ra>
// kernel: deform_conv2d_forward.3
= control target key start
LH: loop header
LB: loop body
LE: loop exit
PB: predicated region body
PF: predicated region fallthrough
CT: control target
= control target key end

     0   :  { %s510_s12 = smov 0   ;;  %s512_s13 = smov 0   ;;  %s598_s0 = inlined_call_operand.vmem [shape: f32[36,512], index: 0, kind: input, shape index: {}]   ;;  %s599_s1 = inlined_call_operand.vmem [shape: f32[18,36], index: 1, kind: input, shape index: {}]   ;;  %s600_s2 = inlined_call_operand.vmem [shape: f32[18,1], index: 2, kind: input, shape index: {}]   ;;  %s601_s3 = inlined_call_operand.vmem [shape: f32[18,512], index: 3, kind: output, shape index: {}]  }
   0x1   :  { %s514_s14 = smov 0  }
   0x2 LB: > { %s404_s15 = sadd.s32 4294967295, %s487_s14   ;;  %s527_s16 = sadd.s32 1, %s487_s14   ;;  %s487_s14 = sphi %s514_s14, %s605_s14   ;;  %s483_s13 = sphi %s512_s13, %s604_s13   ;;  %s479_s12 = sphi %s510_s12, %s603_s12  }
   0x3   : > { %s17_s17 = ssub.s32 %s487_s14, %s527_s16  ;;  %s20_s18 = sadd.s32 1, %s483_s13 }
   0x4   : > { %p18_p0 = scmp.eq.s32.totalorder %s17_s17, 0  ;;  %p27_p1 = scmp.ne.s32.totalorder %s483_s13, %s479_s12 }
   0x5   : > { %p28_p2 = scmp.eq.s32.totalorder %s487_s14, 0  ;;  %p99_p3 = scmp.eq.s32.totalorder %s404_s15, 1 }
   0x6   : > { %s538_s19 = scalar_select %p18_p0, %s483_s13, %s20_s18  }
   0x7   : > { %p29_p4 = por %p28_p2, %p27_p1  ;;  %p540_p5 = por %p99_p3, %p27_p1 }
   0x8   : > { %p407_p6 = scmp.ge.s32.totalorder %s487_s14, 2 }
   0xa   : > { %127 = sbr.rel (%p407_p6) target bundleno = 29 (0x1d), region = 24 }
   0xf   : > { %130 = sbr.rel (!%p29_p4) target bundleno = 29 (0x1d), region = 28  ;;  %s132_s21 = sand.u32 (%p29_p4), 1, %s483_s13  }
  0x10   : > { %s423_s22 = sshll.u32 (%p29_p4), %s487_s14, 4  ;;  %s435_s23 = smul.u32 (%p29_p4), 80, %s132_s21 }
  0x11   : > { %s137_s26 = scalar_lea.vmem (%p29_p4), %s598_s0, %s423_s22 }
  0x12   : > { %v150_v0 = vld [vmem:[%s137_s26] sm:$0xff] (%p29_p4)  ;;  %v152_v1 = vld [vmem:[%s137_s26 + $0x8] sm:$0xff] (%p29_p4)  ;;  %s134_s27 = scalar_lea.vmem (%p29_p4), [#allocation2], %s435_s23 }
  0x13   : > { %v154_v2 = vld [vmem:[%s137_s26 + $0x20] sm:$0xff] (%p29_p4)  ;;  %151 = vst [vmem:[%s134_s27] sm:$0xff] (%p29_p4), %v150_v0  ;;  %v156_v3 = vld [vmem:[%s137_s26 + $0x28] sm:$0xff] (%p29_p4) }
  0x14   : > { %153 = vst [vmem:[%s134_s27 + $0x8] sm:$0xff] %v152_v1  ;;  %v158_v4 = vld [vmem:[%s137_s26 + $0x40] sm:$0xff]  ;;  %v160_v5 = vld [vmem:[%s137_s26 + $0x48] sm:$0xff] }
  0x15   : > { %155 = vst [vmem:[%s134_s27 + $0x10] sm:$0xff] %v154_v2  ;;  %v162_v6 = vld [vmem:[%s137_s26 + $0x60] sm:$0xff]  ;;  %v164_v7 = vld [vmem:[%s137_s26 + $0x68] sm:$0xff] }
  0x16   : > { %157 = vst [vmem:[%s134_s27 + $0x18] sm:$0xff] %v156_v3  ;;  %v166_v8 = vld [vmem:[%s137_s26 + $0x80] sm:$0xff]  ;;  %v168_v9 = vld [vmem:[%s137_s26 + $0x88] sm:$0xff] }
  0x17   : > { %159 = vst [vmem:[%s134_s27 + $0x20] sm:$0xff] %v158_v4 }
  0x18   : > { %161 = vst [vmem:[%s134_s27 + $0x28] sm:$0xff] %v160_v5 }
  0x19   : > { %163 = vst [vmem:[%s134_s27 + $0x30] sm:$0xff] %v162_v6 }
  0x1a   : > { %165 = vst [vmem:[%s134_s27 + $0x38] sm:$0xff] %v164_v7 }
  0x1b   : > { %167 = vst [vmem:[%s134_s27 + $0x40] sm:$0xff] %v166_v8 }
  0x1c   : > { %169 = vst [vmem:[%s134_s27 + $0x48] sm:$0xff] %v168_v9 }
  0x1d PF: > { %p410_p7 = scmp.ge.s32.totalorder %s487_s14, 1  ;;  %p174_p8 = scmp.lt.s32.totalorder %s487_s14, 3 }
  0x1f   : > { %p175_p9 = pnand %p410_p7, %p174_p8 }
  0x20   : > { %s181_s28 = sand.u32 (!%p175_p9), 1, %s479_s12  }
  0x21   : > { %178 = sbr.rel (%p175_p9) target bundleno = 202 (0xca), region = 51 }
  0x22   : > { %s436_s29 = smul.u32 (!%p175_p9), 80, %s181_s28 }
  0x23   : > { %s437_s23 = smul.u32 (!%p175_p9), 48, %s181_s28 }
  0x24   : > { %s183_s7 = scalar_lea.vmem (!%p175_p9), [#allocation2], %s436_s29 }
  0x25   : > { %s202_s24 = scalar_lea.vmem (!%p175_p9), [#allocation3], %s437_s23 }
  0x26   : > { %v489_v10 = vmov 0   ;;  %v218_v11 = vld [vmem:[%s600_s2] sm:$0xff]  ;;  %vm246_vm0 = vcmask 1043456   ;;  %v220_v12 = vld [vmem:[%s600_s2 + $0x10] sm:$0x3]  ;;  %v215_v16 = vld [vmem:[%s183_s7 + $0x38] sm:$0xff] }
  0x27   : > { %463 = vset.pattern.permute.xlu0 %v489_v10  ;;  %464 = vset.pattern.permute.xlu1 %v489_v10  ;;  %v216_v13 = vld [vmem:[%s183_s7 + $0x40] sm:$0xf]  ;;  %v217_v14 = vld [vmem:[%s183_s7 + $0x48] sm:$0xf]  ;;  %v214_v15 = vld [vmem:[%s183_s7 + $0x30] sm:$0xff]  ;;  %vm236_vm1 = vcmask 293888  }
  0x28   : > { %223 = vperm.xlu0 %463, %v218_v11   ;;  %233 = vperm.xlu1 %464, %v220_v12   ;;  %v212_v17 = vld [vmem:[%s183_s7 + $0x20] sm:$0xff]  ;;  %v213_v18 = vld [vmem:[%s183_s7 + $0x28] sm:$0xff]  ;;  %v210_v19 = vld [vmem:[%s183_s7 + $0x10] sm:$0xff]  ;;  %s424_s12 = sshll.u32 (%p540_p5), %s404_s15, 4 }
  0x29   : > { %425 = vmatpush.msk.msra.mxu2 %vm246_vm0, %v216_v13  ;;  %430 = vmatpush.msk.msra.mxu3 %vm246_vm0, %v217_v14  ;;  %v211_v20 = vld [vmem:[%s183_s7 + $0x18] sm:$0xff]  ;;  %v208_v21 = vld [vmem:[%s183_s7] sm:$0xff]  ;;  %v209_v22 = vld [vmem:[%s183_s7 + $0x8] sm:$0xff]  ;;  %s320_s27 = scalar_lea.vmem (%p540_p5), %s601_s3, %s424_s12 }
  0x2a   : > { %411 = vmatpush.msk.msra.mxu0 %vm246_vm0, %v216_v13  ;;  %415 = vmatpush.msk.msra.mxu1 %vm246_vm0, %v217_v14  ;;  %v206_v23 = vld [vmem:[%s599_s1 + $0x8] sm:$0xff]  ;;  %v205_v24 = vld [vmem:[%s599_s1] sm:$0xff]  ;;  %v207_v26 = vld [vmem:[%s599_s1 + $0x10] sm:$0x3] }
  0x2b   : > { %426 = vmatpush.msra.mxu2 %v214_v15  ;;  %431 = vmatpush.msra.mxu3 %v215_v16  ;;  %v219_v25 = vld [vmem:[%s600_s2 + $0x8] sm:$0xff] }
  0x2c   : > { %265 = vmatpush.msra.mxu0 %v214_v15  ;;  %291 = vmatpush.msra.mxu1 %v215_v16 }
  0x2d   : > { %427 = vmatpush.msra.mxu2 %v212_v17  ;;  %432 = vmatpush.msra.mxu3 %v213_v18 }
  0x2e   : > { %266 = vmatpush.msra.mxu0 %v212_v17  ;;  %292 = vmatpush.msra.mxu1 %v213_v18 }
  0x2f   : > { %428 = vmatpush.msra.mxu2 %v210_v19  ;;  %433 = vmatpush.msra.mxu3 %v211_v20 }
  0x30   : > { %267 = vmatpush.msra.mxu0 %v210_v19  ;;  %293 = vmatpush.msra.mxu1 %v211_v20 }
  0x31   : > { %429 = vmatpush.msra.mxu2 %v208_v21  ;;  %434 = vmatpush.msra.mxu3 %v209_v22 }
  0x32   : > { %413 = vmatmul.msk.f32.vlgmr.msra.gmra.mxu2 %vm236_vm1, %v206_v23  ;;  %417 = vmatmul.msk.f32.vlgmr.msra.gmra.mxu3 %vm236_vm1, %v206_v23 }
  0x33   : > { %268 = vmatpush.msra.mxu0 %v208_v21  ;;  %294 = vmatpush.msra.mxu1 %v209_v22 }
  0x34   : > { %412 = vmatmul.msk.f32.vlgmr.msra.gmra.mxu0 %vm236_vm1, %v205_v24  ;;  %416 = vmatmul.msk.f32.vlgmr.msra.gmra.mxu1 %vm236_vm1, %v205_v24 }
  0x35   : > { %228 = vperm.xlu0 %463, %v219_v25  }
  0x3a   : > { %414 = vmatmul.msk.f32.gmra.mxu2 %vm236_vm1, %v207_v26  ;;  %418 = vmatmul.msk.f32.gmra.mxu3 %vm236_vm1, %v207_v26 }
  0x9a   : > { %v224_v27 = vpop.permute.xlu0 %223  ;;  %v234_v37 = vpop.permute.xlu1 %233 }
  0xa7   : > { %v229_v32 = vpop.permute.xlu0 %228 }
  0xb1   : > { %v270_v28 = vpop.f32.mrf.mxu0  ;;  %v296_v29 = vpop.f32.mrf.mxu1 }
  0xb2   : > { %v271_v30 = vadd.f32 %v270_v28, %v224_v27  ;;  %v297_v31 = vadd.f32 %v296_v29, %v224_v27 }
  0xb4   : > { %305 = vst [vmem:[%s202_s24] sm:$0xff] %v271_v30 }
  0xb5   : > { %v273_v33 = vpop.f32.mrf.mxu2  ;;  %306 = vst [vmem:[%s202_s24 + $0x8] sm:$0xff] %v297_v31  ;;  %v299_v34 = vpop.f32.mrf.mxu3 }
  0xb6   : > { %v274_v35 = vadd.f32 %v273_v33, %v229_v32  ;;  %v300_v36 = vadd.f32 %v299_v34, %v229_v32 }
  0xb8   : > { %307 = vst [vmem:[%s202_s24 + $0x10] sm:$0xff] %v274_v35 }
  0xb9   : > { %308 = vst [vmem:[%s202_s24 + $0x18] sm:$0xff] %v300_v36 }
  0xbb   : > { %v333_v42 = vld [vmem:[%s202_s24] sm:$0xff] (%p540_p5) }
  0xbc   : > { %v335_v43 = vld [vmem:[%s202_s24 + $0x8] sm:$0xff] (%p540_p5)  ;;  %334 = vst [vmem:[%s320_s27] sm:$0xff] (%p540_p5), %v333_v42 }
  0xbd   : > { %v276_v38 = vpop.f32.mrf.mxu2  ;;  %v302_v39 = vpop.f32.mrf.mxu3  ;;  %317 = sbr.rel (!%p540_p5) target bundleno = 202 (0xca), region = 59  ;;  %336 = vst [vmem:[%s320_s27 + $0x8] sm:$0xff] (%p540_p5), %v335_v43 }
  0xbe   : > { %v277_v40 = vadd.f32 %v276_v38, %v234_v37  ;;  %v303_v41 = vadd.f32 %v302_v39, %v234_v37 }
  0xbf   : > { %v337_v44 = vld [vmem:[%s202_s24 + $0x10] sm:$0xff] (%p540_p5) }
  0xc0   : > { %309 = vst [vmem:[%s202_s24 + $0x20] sm:$0x3] %v277_v40  ;;  %v339_v45 = vld [vmem:[%s202_s24 + $0x18] sm:$0xff] (%p540_p5) }
  0xc1   : > { %310 = vst [vmem:[%s202_s24 + $0x28] sm:$0x3] %v303_v41 }
  0xc2   : > { %338 = vst [vmem:[%s320_s27 + $0x20] sm:$0xff] %v337_v44 }
  0xc3   : > { %340 = vst [vmem:[%s320_s27 + $0x28] sm:$0xff] %v339_v45 }
  0xc7   : > { %v341_v46 = vld [vmem:[%s202_s24 + $0x20] sm:$0xff] }
  0xc8   : > { %v343_v47 = vld [vmem:[%s202_s24 + $0x28] sm:$0xff]  ;;  %342 = vst [vmem:[%s320_s27 + $0x40] sm:$0xff] %v341_v46 }
  0xc9   : > { %344 = vst [vmem:[%s320_s27 + $0x48] sm:$0xff] %v343_v47 }
  0xca PF: > { %p10_p10 = scmp.ge.s32.totalorder %s527_s16, 4   ;;  %s603_s12 = smov %s483_s13 }
  0xcb   : > { %s604_s13 = smov %s538_s19  ;;  %s605_s14 = smov %s527_s16 }
  0xcc   :  { %12 = sbr.rel (!%p10_p10) target bundleno = 2 (0x2), region = 113 }

// kernel: squeeze.1
= control target key start
LH: loop header
LB: loop body
LE: loop exit
PB: predicated region body
PF: predicated region fallthrough
CT: control target
= control target key end

     0   :  { %s88_s8 = smov 112   ;;  %s89_s11 = smov 80   ;;  %vm3_vm0 = vcmask 130048   ;;  %vm9_vm1 = vcmask 1048448   ;;  %vm15_vm2 = vcmask 917248   ;;  %vm21_vm3 = vcmask 786048   ;;  %s141_s0 = inlined_call_operand.vmem [shape: f32[2,1,16,16], index: 0, kind: input, shape index: {}]   ;;  %s142_s1 = inlined_call_operand.vmem [shape: f32[1,512], index: 1, kind: output, shape index: {}]  }
   0x1   :  { %v71_v0 = vld [vmem:[%s141_s0 + $0x7] ss:$8 sm:$0xf]   ;;  %v73_v1 = vld [vmem:[%s141_s0 + $0x5] ss:$8 sm:$0xf]  }
   0x2   :  { %7 = vrot.lane.b32.xlu0 %v71_v0, %s88_s8  ;;  %19 = vrot.lane.b32.xlu1 %v73_v1, %s89_s11  ;;  %v75_v2 = vld [vmem:[%s141_s0 + $0x3] ss:$8 sm:$0xf]   ;;  %s90_s14 = smov 48   ;;  %s91_s19 = smov 96   ;;  %vm27_vm4 = vcmask 654848  }
   0x3   :  { %31 = vrot.lane.b32.xlu2 %v75_v2, %s90_s14  ;;  %v72_v3 = vld [vmem:[%s141_s0 + $0x6] ss:$8 sm:$0xf]   ;;  %v74_v4 = vld [vmem:[%s141_s0 + $0x4] ss:$8 sm:$0xf]  }
   0x4   :  { %s92_s20 = smov 64   ;;  %v76_v5 = vld [vmem:[%s141_s0 + $0x2] ss:$8 sm:$0xf]   ;;  %s93_s23 = smov 32   ;;  %vm33_vm5 = vcmask 523648  }
   0x5   :  { %v77_v6 = vld [vmem:[%s141_s0 + $0x1] ss:$8 sm:$0xf]   ;;  %s94_s26 = smov 16   ;;  %vm39_vm6 = vcmask 392448   ;;  %vm45_vm7 = vcmask 261248  }
   0x6   :  { %v2_v7 = vld [vmem:[%s141_s0] ss:$8 sm:$0xf]  }
   0x7   :  { %4 = vst.msk [vmem:[#allocation0] ss:$8 sm:$0xf] %vm3_vm0, %v2_v7  }
   0xa   :  { %13 = vrot.lane.b32.xlu0 %v72_v3, %s91_s19  ;;  %25 = vrot.lane.b32.xlu1 %v74_v4, %s92_s20 }
   0xb   :  { %37 = vrot.lane.b32.xlu2 %v76_v5, %s93_s23 }
  0x12   :  { %43 = vrot.lane.b32.xlu0 %v77_v6, %s94_s26 }
  0x5d   :  { %v32_v8 = vpop.permute.xlu2 %31  }
  0x65   :  { %v38_v9 = vpop.permute.xlu2 %37  }
  0x74   :  { %v8_v10 = vpop.permute.xlu0 %7   ;;  %v20_v11 = vpop.permute.xlu1 %19  }
  0x75   :  { %10 = vst.msk [vmem:[#allocation0] ss:$8 sm:$0xf] %vm9_vm1, %v8_v10  }
  0x7c   :  { %v14_v12 = vpop.permute.xlu0 %13   ;;  %v26_v13 = vpop.permute.xlu1 %25  }
  0x7d   :  { %16 = vst.msk [vmem:[#allocation0] ss:$8 sm:$0xf] %vm15_vm2, %v14_v12  }
  0x7e   :  { %22 = vst.msk [vmem:[#allocation0] ss:$8 sm:$0xf] %vm21_vm3, %v20_v11  }
  0x7f   :  { %28 = vst.msk [vmem:[#allocation0] ss:$8 sm:$0xf] %vm27_vm4, %v26_v13  }
  0x80   :  { %34 = vst.msk [vmem:[#allocation0] ss:$8 sm:$0xf] %vm33_vm5, %v32_v8  }
  0x81   :  { %40 = vst.msk [vmem:[#allocation0] ss:$8 sm:$0xf] %vm39_vm6, %v38_v9  }
  0x84   :  { %v44_v14 = vpop.permute.xlu0 %43  }
  0x85   :  { %46 = vst.msk [vmem:[#allocation0] ss:$8 sm:$0xf] %vm45_vm7, %v44_v14  }
  0x8c   :  { %v49_v15 = vld [vmem:[#allocation0] sm:$0x1]  ;;  %v54_v16 = vld [vmem:[#allocation0 + $0x8] sm:$0x1]  ;;  %v60_v17 = vld [vmem:[#allocation0 + $0x10] sm:$0x1] }
  0x8d   :  { %52 = vst [vmem:[%s142_s1] sm:$0x1] %v49_v15  ;;  %v66_v18 = vld [vmem:[#allocation0 + $0x18] sm:$0x1] }
  0x8e   :  { %78 = vst [vmem:[%s142_s1 + $0x1] sm:$0x1] %v54_v16 }
  0x8f   :  { %79 = vst [vmem:[%s142_s1 + $0x2] sm:$0x1] %v60_v17 }
  0x90   :  { %80 = vst [vmem:[%s142_s1 + $0x3] sm:$0x1] %v66_v18 }

// kernel: deform_conv2d_forward.4
= control target key start
LH: loop header
LB: loop body
LE: loop exit
PB: predicated region body
PF: predicated region fallthrough
CT: control target
= control target key end

     0   :  { %s764_s15 = smov 0   ;;  %s766_s16 = smov 0   ;;  %s933_s0 = inlined_call_operand.vmem [shape: f32[4,9,512], index: 0, kind: input, shape index: {}]   ;;  %s934_s1 = inlined_call_operand.vmem [shape: f32[4,9,512], index: 1, kind: input, shape index: {}]   ;;  %s935_s2 = inlined_call_operand.vmem [shape: f32[1,512], index: 2, kind: input, shape index: {}]   ;;  %s936_s3 = inlined_call_operand.vmem [shape: f32[9,512], index: 3, kind: output, shape index: {0}]   ;;  %s937_s4 = inlined_call_operand.vmem [shape: f32[9,512], index: 4, kind: output, shape index: {1}]  }
   0x1   :  { %s768_s17 = smov 0  }
   0x2 LB: > { %s780_s18 = sadd.s32 4294967295, %s737_s17   ;;  %s783_s19 = sadd.s32 1, %s737_s17   ;;  %s737_s17 = sphi %s768_s17, %s942_s17   ;;  %s733_s16 = sphi %s766_s16, %s941_s16   ;;  %s729_s15 = sphi %s764_s15, %s940_s15  }
   0x3   : > { %s19_s20 = ssub.s32 %s737_s17, %s783_s19  ;;  %s22_s21 = sadd.s32 1, %s733_s16 }
   0x4   : > { %p20_p0 = scmp.eq.s32.totalorder %s19_s20, 0  ;;  %p29_p1 = scmp.ne.s32.totalorder %s733_s16, %s729_s15 }
   0x5   : > { %p30_p2 = scmp.eq.s32.totalorder %s737_s17, 0  ;;  %p111_p3 = scmp.eq.s32.totalorder %s780_s18, 1 }
   0x6   : > { %s793_s22 = scalar_select %p20_p0, %s733_s16, %s22_s21  }
   0x7   : > { %p795_p4 = por %p30_p2, %p29_p1  ;;  %p799_p5 = por %p111_p3, %p29_p1 }
   0x8   : > { %p634_p6 = scmp.ge.s32.totalorder %s737_s17, 2 }
   0xa   : > { %159 = sbr.rel (%p634_p6) target bundleno = 55 (0x37), region = 16 }
   0xf   : > { %162 = sbr.rel (!%p795_p4) target bundleno = 35 (0x23), region = 20  ;;  %s164_s25 = sand.u32 (%p795_p4), 1, %s733_s16  }
  0x10   : > { %s679_s26 = sshll.u32 (%p795_p4), %s737_s17, 4  ;;  %s635_s27 = sshll.u32 (%p795_p4), %s164_s25, 7 }
  0x11   : > { %s811_s30 = scalar_lea.vmem (%p795_p4), %s933_s0, %s679_s26  ;;  %s166_s5 = scalar_lea.vmem (%p795_p4), [#allocation2], %s635_s27 }
  0x12   : > { %v182_v0 = vld [vmem:[%s811_s30] sm:$0xff] (%p795_p4)  ;;  %v184_v1 = vld [vmem:[%s811_s30 + $0x8] sm:$0xff] (%p795_p4) }
  0x13   : > { %v186_v2 = vld [vmem:[%s811_s30 + $0x20] sm:$0xff] (%p795_p4)  ;;  %183 = vst [vmem:[%s166_s5] sm:$0xff] (%p795_p4), %v182_v0  ;;  %v188_v3 = vld [vmem:[%s811_s30 + $0x28] sm:$0xff] (%p795_p4) }
  0x14   : > { %185 = vst [vmem:[%s166_s5 + $0x8] sm:$0xff] %v184_v1  ;;  %v190_v4 = vld [vmem:[%s811_s30 + $0x40] sm:$0xff]  ;;  %v192_v5 = vld [vmem:[%s811_s30 + $0x48] sm:$0xff] }
  0x15   : > { %187 = vst [vmem:[%s166_s5 + $0x10] sm:$0xff] %v186_v2  ;;  %v194_v6 = vld [vmem:[%s811_s30 + $0x60] sm:$0xff]  ;;  %v196_v7 = vld [vmem:[%s811_s30 + $0x68] sm:$0xff] }
  0x16   : > { %189 = vst [vmem:[%s166_s5 + $0x18] sm:$0xff] %v188_v3  ;;  %v198_v8 = vld [vmem:[%s811_s30 + $0x80] sm:$0xff]  ;;  %v200_v9 = vld [vmem:[%s811_s30 + $0x88] sm:$0xff] }
  0x17   : > { %191 = vst [vmem:[%s166_s5 + $0x20] sm:$0xff] %v190_v4  ;;  %v202_v10 = vld [vmem:[%s811_s30 + $0xa0] sm:$0xff]  ;;  %v204_v11 = vld [vmem:[%s811_s30 + $0xa8] sm:$0xff] }
  0x18   : > { %193 = vst [vmem:[%s166_s5 + $0x28] sm:$0xff] %v192_v5  ;;  %v206_v12 = vld [vmem:[%s811_s30 + $0xc0] sm:$0xff]  ;;  %v208_v13 = vld [vmem:[%s811_s30 + $0xc8] sm:$0xff] }
  0x19   : > { %195 = vst [vmem:[%s166_s5 + $0x30] sm:$0xff] %v194_v6  ;;  %v210_v14 = vld [vmem:[%s811_s30 + $0xe0] sm:$0xff]  ;;  %v212_v15 = vld [vmem:[%s811_s30 + $0xe8] sm:$0xff] }
  0x1a   : > { %197 = vst [vmem:[%s166_s5 + $0x38] sm:$0xff] %v196_v7 }
  0x1b   : > { %199 = vst [vmem:[%s166_s5 + $0x40] sm:$0xff] %v198_v8 }
  0x1c   : > { %201 = vst [vmem:[%s166_s5 + $0x48] sm:$0xff] %v200_v9 }
  0x1d   : > { %203 = vst [vmem:[%s166_s5 + $0x50] sm:$0xff] %v202_v10 }
  0x1e   : > { %205 = vst [vmem:[%s166_s5 + $0x58] sm:$0xff] %v204_v11 }
  0x1f   : > { %207 = vst [vmem:[%s166_s5 + $0x60] sm:$0xff] %v206_v12 }
  0x20   : > { %209 = vst [vmem:[%s166_s5 + $0x68] sm:$0xff] %v208_v13 }
  0x21   : > { %211 = vst [vmem:[%s166_s5 + $0x70] sm:$0xff] %v210_v14 }
  0x22   : > { %213 = vst [vmem:[%s166_s5 + $0x78] sm:$0xff] %v212_v15 }
  0x23 PF: > { %219 = sbr.rel (!%p795_p4) target bundleno = 55 (0x37), region = 43  ;;  %s221_s6 = sand.u32 (%p795_p4), 1, %s733_s16  }
  0x24   : > { %s680_s7 = sshll.u32 (%p795_p4), %s737_s17, 4  ;;  %s638_s8 = sshll.u32 (%p795_p4), %s221_s6, 7 }
  0x25   : > { %s836_s11 = scalar_lea.vmem (%p795_p4), %s934_s1, %s680_s7  ;;  %s223_s12 = scalar_lea.vmem (%p795_p4), [#allocation3], %s638_s8 }
  0x26   : > { %v239_v16 = vld [vmem:[%s836_s11] sm:$0xff] (%p795_p4)  ;;  %v241_v17 = vld [vmem:[%s836_s11 + $0x8] sm:$0xff] (%p795_p4) }
  0x27   : > { %v243_v18 = vld [vmem:[%s836_s11 + $0x20] sm:$0xff] (%p795_p4)  ;;  %240 = vst [vmem:[%s223_s12] sm:$0xff] (%p795_p4), %v239_v16  ;;  %v245_v19 = vld [vmem:[%s836_s11 + $0x28] sm:$0xff] (%p795_p4) }
  0x28   : > { %242 = vst [vmem:[%s223_s12 + $0x8] sm:$0xff] %v241_v17  ;;  %v247_v20 = vld [vmem:[%s836_s11 + $0x40] sm:$0xff]  ;;  %v249_v21 = vld [vmem:[%s836_s11 + $0x48] sm:$0xff] }
  0x29   : > { %244 = vst [vmem:[%s223_s12 + $0x10] sm:$0xff] %v243_v18  ;;  %v251_v22 = vld [vmem:[%s836_s11 + $0x60] sm:$0xff]  ;;  %v253_v23 = vld [vmem:[%s836_s11 + $0x68] sm:$0xff] }
  0x2a   : > { %246 = vst [vmem:[%s223_s12 + $0x18] sm:$0xff] %v245_v19  ;;  %v255_v24 = vld [vmem:[%s836_s11 + $0x80] sm:$0xff]  ;;  %v257_v25 = vld [vmem:[%s836_s11 + $0x88] sm:$0xff] }
  0x2b   : > { %248 = vst [vmem:[%s223_s12 + $0x20] sm:$0xff] %v247_v20  ;;  %v259_v26 = vld [vmem:[%s836_s11 + $0xa0] sm:$0xff]  ;;  %v261_v27 = vld [vmem:[%s836_s11 + $0xa8] sm:$0xff] }
  0x2c   : > { %250 = vst [vmem:[%s223_s12 + $0x28] sm:$0xff] %v249_v21  ;;  %v263_v28 = vld [vmem:[%s836_s11 + $0xc0] sm:$0xff]  ;;  %v265_v29 = vld [vmem:[%s836_s11 + $0xc8] sm:$0xff] }
  0x2d   : > { %252 = vst [vmem:[%s223_s12 + $0x30] sm:$0xff] %v251_v22  ;;  %v267_v30 = vld [vmem:[%s836_s11 + $0xe0] sm:$0xff]  ;;  %v269_v31 = vld [vmem:[%s836_s11 + $0xe8] sm:$0xff] }
  0x2e   : > { %254 = vst [vmem:[%s223_s12 + $0x38] sm:$0xff] %v253_v23 }
  0x2f   : > { %256 = vst [vmem:[%s223_s12 + $0x40] sm:$0xff] %v255_v24 }
  0x30   : > { %258 = vst [vmem:[%s223_s12 + $0x48] sm:$0xff] %v257_v25 }
  0x31   : > { %260 = vst [vmem:[%s223_s12 + $0x50] sm:$0xff] %v259_v26 }
  0x32   : > { %262 = vst [vmem:[%s223_s12 + $0x58] sm:$0xff] %v261_v27 }
  0x33   : > { %264 = vst [vmem:[%s223_s12 + $0x60] sm:$0xff] %v263_v28 }
  0x34   : > { %266 = vst [vmem:[%s223_s12 + $0x68] sm:$0xff] %v265_v29 }
  0x35   : > { %268 = vst [vmem:[%s223_s12 + $0x70] sm:$0xff] %v267_v30 }
  0x36   : > { %270 = vst [vmem:[%s223_s12 + $0x78] sm:$0xff] %v269_v31 }
  0x37 PF: > { %p641_p7 = scmp.ge.s32.totalorder %s737_s17, 1  ;;  %p283_p8 = scmp.lt.s32.totalorder %s737_s17, 3 }
  0x39   : > { %p284_p9 = pnand %p641_p7, %p283_p8 }
  0x3a   : > { %s290_s13 = sand.u32 (!%p284_p9), 1, %s729_s15   ;;  %s646_s14 = sshll.u32 (!%p284_p9), %s780_s18, 1 }
  0x3b   : > { %287 = sbr.rel (%p284_p9) target bundleno = 120 (0x78), region = 70  ;;  %s642_s20 = sshll.u32 (!%p284_p9), %s290_s13, 7 }
  0x3c   : > { %p336_p10 = scmp.lt.s32.totalorder (!%p284_p9), %s646_s14, 3  ;;  %s860_s21 = scalar_lea.vmem (!%p284_p9), [#allocation3], %s642_s20 }
  0x3d   : > { %s863_s17 = scalar_lea.vmem (!%p284_p9), [#allocation2], %s642_s20  ;;  %s644_s27 = sshll.u32 (!%p284_p9), %s290_s13, 5 }
  0x3e   : > { %s901_s28 = scalar_lea.vmem (!%p284_p9), [#allocation5], %s644_s27  ;;  %s326_s15 = scalar_lea.vmem (!%p284_p9), [#allocation4], %s644_s27 }
  0x40   : > { %v342_v32 = vld [vmem:[%s860_s21] sm:$0xff]  ;;  %s944_s14 = smov (!%p336_p10, %s646_s14), 3  ;;  %v343_v43 = vld [vmem:[%s860_s21 + $0x8] sm:$0xff]  ;;  %v344_v57 = vld [vmem:[%s860_s21 + $0x10] sm:$0x1]  ;;  %s681_s29 = sshll.u32 (%p799_p5), %s780_s18, 4 }
  0x41   : > { %v346_v33 = vld [vmem:[%s863_s17] sm:$0xff]  ;;  %v347_v44 = vld [vmem:[%s863_s17 + $0x8] sm:$0xff]  ;;  %s338_s26 = scalar_lea.vmem %s935_s2, %s944_s14  ;;  %v348_v62 = vld [vmem:[%s863_s17 + $0x10] sm:$0x1]  ;;  %s467_s6 = scalar_lea.vmem (%p799_p5), %s936_s3, %s681_s29 }
  0x42   : > { %v647_v34 = vld [vmem:[%s860_s21 + $0x20] sm:$0xff]  ;;  %v350_v35 = vmul.f32 %v346_v33, %v342_v32  ;;  %v648_v45 = vld [vmem:[%s860_s21 + $0x28] sm:$0xff]  ;;  %v351_v49 = vmul.f32 %v347_v44, %v343_v43  ;;  %v649_v63 = vld [vmem:[%s860_s21 + $0x30] sm:$0x1]  ;;  %v352_v1 = vmul.f32 %v348_v62, %v344_v57 }
  0x43   : > { %v651_v36 = vld [vmem:[%s863_s17 + $0x20] sm:$0xff]  ;;  %v652_v46 = vld [vmem:[%s863_s17 + $0x28] sm:$0xff]  ;;  %v653_v2 = vld [vmem:[%s863_s17 + $0x30] sm:$0x1] }
  0x44   : > { %v655_v37 = vld [vmem:[%s860_s21 + $0x40] sm:$0xff]  ;;  %v364_v39 = vmul.f32 %v651_v36, %v647_v34  ;;  %v365_v50 = vmul.f32 %v652_v46, %v648_v45  ;;  %v656_v51 = vld [vmem:[%s860_s21 + $0x48] sm:$0xff]  ;;  %v657_v3 = vld [vmem:[%s860_s21 + $0x50] sm:$0x1]  ;;  %v366_v6 = vmul.f32 %v653_v2, %v649_v63 }
  0x45   : > { %v659_v38 = vld [vmem:[%s863_s17 + $0x40] sm:$0xff]  ;;  %v660_v52 = vld [vmem:[%s863_s17 + $0x48] sm:$0xff]  ;;  %v661_v7 = vld [vmem:[%s863_s17 + $0x50] sm:$0x1] }
  0x46   : > { %v382_v40 = vmul.f32 %v659_v38, %v655_v37  ;;  %v663_v41 = vld [vmem:[%s860_s21 + $0x60] sm:$0xff]  ;;  %v368_v47 = vadd.f32 %v364_v39, %v350_v35  ;;  %v664_v53 = vld [vmem:[%s860_s21 + $0x68] sm:$0xff]  ;;  %v383_v55 = vmul.f32 %v660_v52, %v656_v51  ;;  %v369_v60 = vadd.f32 %v365_v50, %v351_v49  ;;  %v665_v8 = vld [vmem:[%s860_s21 + $0x70] sm:$0x1] }
  0x47   : > { %v667_v42 = vld [vmem:[%s863_s17 + $0x60] sm:$0xff]  ;;  %v668_v56 = vld [vmem:[%s863_s17 + $0x68] sm:$0xff]  ;;  %v669_v9 = vld [vmem:[%s863_s17 + $0x70] sm:$0x1]  ;;  %v384_v10 = vmul.f32 %v661_v7, %v657_v3  ;;  %v370_v17 = vadd.f32 %v366_v6, %v352_v1 }
  0x48   : > { %v400_v48 = vmul.f32 %v667_v42, %v663_v41  ;;  %v408_v54 = vld [vmem:[%s338_s26] sm:$0x3]  ;;  %v386_v58 = vadd.f32 %v382_v40, %v368_v47  ;;  %v401_v61 = vmul.f32 %v668_v56, %v664_v53  ;;  %v387_v5 = vadd.f32 %v383_v55, %v369_v60  ;;  %v345_v12 = vld [vmem:[%s860_s21 + $0x18] sm:$0x1] }
  0x49   : > { %v410_v59 = vperm.slane %v408_v54, 0  ;;  %v411_v0 = vperm.slane %v408_v54, 1  ;;  %v402_v11 = vmul.f32 %v669_v9, %v665_v8  ;;  %v349_v13 = vld [vmem:[%s863_s17 + $0x18] sm:$0x1]  ;;  %v388_v28 = vadd.f32 %v384_v10, %v370_v17 }
  0x4a   : > { %v404_v4 = vadd.f32 %v400_v48, %v386_v58  ;;  %v650_v14 = vld [vmem:[%s860_s21 + $0x38] sm:$0x1]  ;;  %v405_v16 = vadd.f32 %v401_v61, %v387_v5  ;;  %v353_v18 = vmul.f32 %v349_v13, %v345_v12 }
  0x4b   : > { %v654_v19 = vld [vmem:[%s863_s17 + $0x38] sm:$0x1]  ;;  %v406_v33 = vadd.f32 %v402_v11, %v388_v28 }
  0x4c   : > { %v414_v15 = vsub.f32 %v410_v59, %v404_v4  ;;  %v658_v20 = vld [vmem:[%s860_s21 + $0x58] sm:$0x1]  ;;  %v367_v22 = vmul.f32 %v654_v19, %v650_v14  ;;  %v415_v27 = vsub.f32 %v411_v0, %v405_v16 }
  0x4d   : > { %v662_v21 = vld [vmem:[%s863_s17 + $0x58] sm:$0x1]  ;;  %v416_v37 = vsub.f32 %v410_v59, %v406_v33 }
  0x4e   : > { %v385_v23 = vmul.f32 %v662_v21, %v658_v20  ;;  %v666_v24 = vld [vmem:[%s860_s21 + $0x78] sm:$0x1]  ;;  %v418_v26 = vand.u32 2147483647, %v414_v15  ;;  %v371_v29 = vadd.f32 %v367_v22, %v353_v18  ;;  %v419_v32 = vand.u32 2147483647, %v415_v27 }
  0x4f   : > { %v670_v25 = vld [vmem:[%s863_s17 + $0x78] sm:$0x1]  ;;  %v420_v40 = vand.u32 2147483647, %v416_v37 }
  0x50   : > { %v403_v30 = vmul.f32 %v670_v25, %v666_v24  ;;  %v422_v31 = vsub.f32 0.0, %v418_v26  ;;  %v389_v34 = vadd.f32 %v385_v23, %v371_v29  ;;  %v423_v36 = vsub.f32 0.0, %v419_v32 }
  0x51   : > { %v424_v42 = vsub.f32 0.0, %v420_v40 }
  0x52   : > { %v426_v35 = vmul.f32 1.442695, %v422_v31  ;;  %v407_v38 = vadd.f32 %v403_v30, %v389_v34  ;;  %v428_v39 = vmul.f32 1.442695, %v423_v36 }
  0x53   : > { %v430_v44 = vmul.f32 1.442695, %v424_v42 }
  0x54   : > { %707 = vpow2.f32 %v426_v35  ;;  %v417_v41 = vsub.f32 %v411_v0, %v407_v38 }
  0x55   : > { %709 = vpow2.f32 %v428_v39 }
  0x56   : > { %v421_v43 = vand.u32 2147483647, %v417_v41  ;;  %711 = vpow2.f32 %v430_v44 }
  0x58   : > { %v425_v45 = vsub.f32 0.0, %v421_v43 }
  0x5a   : > { %v708_v46 = vpop.eup %707  ;;  %v432_v47 = vmul.f32 1.442695, %v425_v45 }
  0x5b   : > { %434 = vst [vmem:[%s901_s28] sm:$0xff] %v708_v46  ;;  %v438_v48 = vmul.f32 %v708_v46, %v708_v46  ;;  %v710_v49 = vpop.eup %709 }
  0x5c   : > { %435 = vst [vmem:[%s901_s28 + $0x8] sm:$0xff] %v710_v49  ;;  %713 = vpow2.f32 %v432_v47  ;;  %v439_v51 = vmul.f32 %v710_v49, %v710_v49  ;;  %v712_v54 = vpop.eup %711 }
  0x5d   : > { %v442_v50 = vmul.f32 %v438_v48, %v438_v48  ;;  %436 = vst [vmem:[%s901_s28 + $0x10] sm:$0x1] %v712_v54  ;;  %v440_v56 = vmul.f32 %v712_v54, %v712_v54 }
  0x5e   : > { %v443_v53 = vmul.f32 %v439_v51, %v439_v51 }
  0x5f   : > { %v446_v52 = vadd.f32 0.25, %v442_v50  ;;  %v444_v58 = vmul.f32 %v440_v56, %v440_v56 }
  0x60   : > { %v447_v55 = vadd.f32 0.25, %v443_v53 }
  0x61   : > { %450 = vst [vmem:[%s326_s15] sm:$0xff] %v446_v52  ;;  %v448_v60 = vadd.f32 0.25, %v444_v58 }
  0x62   : > { %v714_v57 = vpop.eup %713  ;;  %451 = vst [vmem:[%s326_s15 + $0x8] sm:$0xff] %v447_v55 }
  0x63   : > { %437 = vst [vmem:[%s901_s28 + $0x18] sm:$0x1] %v714_v57  ;;  %v441_v59 = vmul.f32 %v714_v57, %v714_v57 }
  0x64   : > { %452 = vst [vmem:[%s326_s15 + $0x10] sm:$0x1] %v448_v60 }
  0x65   : > { %v445_v61 = vmul.f32 %v441_v59, %v441_v59  ;;  %464 = sbr.rel (!%p799_p5) target bundleno = 114 (0x72), region = 82 }
  0x67   : > { %v449_v62 = vadd.f32 0.25, %v445_v61 }
  0x68   : > { %v480_v63 = vld [vmem:[%s326_s15] sm:$0xff] (%p799_p5) }
  0x69   : > { %453 = vst [vmem:[%s326_s15 + $0x18] sm:$0x1] %v449_v62  ;;  %v482_v0 = vld [vmem:[%s326_s15 + $0x8] sm:$0xff] (%p799_p5) }
  0x6a   : > { %481 = vst [vmem:[%s467_s6] sm:$0xff] %v480_v63 }
  0x6b   : > { %v484_v1 = vld [vmem:[%s326_s15 + $0x10] sm:$0xff]  ;;  %483 = vst [vmem:[%s467_s6 + $0x8] sm:$0xff] %v482_v0 }
  0x6c   : > { %485 = vst [vmem:[%s467_s6 + $0x20] sm:$0xff] %v484_v1 }
  0x70   : > { %v486_v2 = vld [vmem:[%s326_s15 + $0x18] sm:$0xff] }
  0x71   : > { %487 = vst [vmem:[%s467_s6 + $0x28] sm:$0xff] %v486_v2 }
  0x72 PF: > { %493 = sbr.rel (!%p799_p5) target bundleno = 120 (0x78), region = 105  ;;  %s682_s7 = sshll.u32 (%p799_p5), %s780_s18, 4  ;;  %v509_v3 = vld [vmem:[%s901_s28] sm:$0xff] (%p799_p5)  ;;  %v511_v4 = vld [vmem:[%s901_s28 + $0x8] sm:$0xff] (%p799_p5)  ;;  %v513_v5 = vld [vmem:[%s901_s28 + $0x10] sm:$0xff] (%p799_p5) }
  0x73   : > { %s496_s10 = scalar_lea.vmem (%p799_p5), %s937_s4, %s682_s7  ;;  %v515_v6 = vld [vmem:[%s901_s28 + $0x18] sm:$0xff] (%p799_p5) }
  0x74   : > { %510 = vst [vmem:[%s496_s10] sm:$0xff] (%p799_p5), %v509_v3 }
  0x75   : > { %512 = vst [vmem:[%s496_s10 + $0x8] sm:$0xff] (%p799_p5), %v511_v4 }
  0x76   : > { %514 = vst [vmem:[%s496_s10 + $0x20] sm:$0xff] (%p799_p5), %v513_v5 }
  0x77   : > { %516 = vst [vmem:[%s496_s10 + $0x28] sm:$0xff] %v515_v6 }
  0x78 PF: > { %p12_p11 = scmp.ge.s32.totalorder %s783_s19, 4   ;;  %s940_s15 = smov %s733_s16 }
  0x79   : > { %s941_s16 = smov %s793_s22  ;;  %s942_s17 = smov %s783_s19 }
  0x7a   :  { %14 = sbr.rel (!%p12_p11) target bundleno = 2 (0x2), region = 188 }

// kernel: tile.9
= control target key start
LH: loop header
LB: loop body
LE: loop exit
PB: predicated region body
PF: predicated region fallthrough
CT: control target
= control target key end

     0   :  { %vm40_vm0 = vcmask 1047556   ;;  %s116_s24 = smov 18   ;;  %s117_s25 = smov 9   ;;  %vm42_vm1 = vcmask 72704   ;;  %vm57_vm2 = vcmask 294104   ;;  %vm74_vm3 = vcmask 220304   ;;  %s183_s0 = inlined_call_operand.vmem [shape: f32[4,9,9], index: 0, kind: input, shape index: {}]   ;;  %s184_s1 = inlined_call_operand.vmem [shape: f32[36,9], index: 1, kind: output, shape index: {}]  }
   0x1   :  { %v101_v0 = vld [vmem:[%s183_s0 + $0x1c] sm:$0xf]  ;;  %v102_v1 = vld [vmem:[%s183_s0 + $0x18] sm:$0xf]  ;;  %v103_v2 = vld [vmem:[%s183_s0 + $0x14] sm:$0xf] }
   0x2   :  { %11 = vst [vmem:[#allocation0 + $0x38] sm:$0xf] %v101_v0  ;;  %v104_v3 = vld [vmem:[%s183_s0 + $0x10] sm:$0xf]  ;;  %v105_v4 = vld [vmem:[%s183_s0 + $0xc] sm:$0xf] }
   0x3   :  { %15 = vst [vmem:[#allocation0 + $0x30] sm:$0xf] %v102_v1  ;;  %v106_v5 = vld [vmem:[%s183_s0 + $0x8] sm:$0xf]  ;;  %v107_v6 = vld [vmem:[%s183_s0 + $0x4] sm:$0xf] }
   0x4   :  { %19 = vst [vmem:[#allocation0 + $0x28] sm:$0xf] %v103_v2  ;;  %v36_v7 = vld [vmem:[%s183_s0] sm:$0xf]  ;;  %vm91_vm4 = vcmask 146504  }
   0x5   :  { %23 = vst [vmem:[#allocation0 + $0x20] sm:$0xf] %v104_v3  ;;  %v100_v8 = vld [vmem:[%s183_s0 + $0x20] sm:$0xf]  ;;  %s115_s0 = smov 27  }
   0x6   :  { %27 = vst [vmem:[#allocation0 + $0x18] sm:$0xf] %v105_v4 }
   0x7   :  { %31 = vst [vmem:[#allocation0 + $0x10] sm:$0xf] %v106_v5 }
   0x8   :  { %35 = vst [vmem:[#allocation0 + $0x8] sm:$0xf] %v107_v6 }
   0x9   :  { %37 = vst [vmem:[#allocation0] sm:$0xf] %v36_v7 }
   0xa   :  { %7 = vst [vmem:[#allocation0 + $0x40] sm:$0xf] %v100_v8 }
   0xc   :  { %v52_v9 = vld [vmem:[#allocation0 + $0x3] ss:$8 sm:$0xf0]   ;;  %v69_v10 = vld [vmem:[#allocation0 + $0x2] ss:$8 sm:$0xf0]  }
   0xd   :  { %v86_v11 = vld [vmem:[#allocation0 + $0x1] ss:$8 sm:$0xf0]   ;;  %v39_v22 = vld [vmem:[#allocation0] ss:$8 sm:$0xf0]  }
  0x10   :  { %v50_v12 = vld [vmem:[#allocation0 + $0x3] ss:$8 sm:$0xf]   ;;  %v67_v13 = vld [vmem:[#allocation0 + $0x2] ss:$8 sm:$0xf]  }
  0x11   :  { %v54_v14 = vsel %vm40_vm0, %v52_v9, %v50_v12  ;;  %v71_v15 = vsel %vm40_vm0, %v69_v10, %v67_v13  ;;  %v84_v16 = vld [vmem:[#allocation0 + $0x1] ss:$8 sm:$0xf]   ;;  %v60_v18 = vld [vmem:[#allocation0 + $0x43] sm:$0x1]  }
  0x12   :  { %55 = vrot.lane.b32.xlu0 %v54_v14, %s115_s0  ;;  %72 = vrot.lane.b32.xlu1 %v71_v15, %s116_s24  ;;  %v88_v17 = vsel %vm40_vm0, %v86_v11, %v84_v16  ;;  %v77_v19 = vld [vmem:[#allocation0 + $0x42] sm:$0x1]   ;;  %v94_v20 = vld [vmem:[#allocation0 + $0x41] sm:$0x1]   ;;  %v45_v24 = vld [vmem:[#allocation0 + $0x40] sm:$0x1]  }
  0x13   :  { %89 = vrot.lane.b32.xlu2 %v88_v17, %s117_s25  ;;  %v38_v21 = vld [vmem:[#allocation0] ss:$8 sm:$0xf]   ;;  %108 = vst.msk [vmem:[%s184_s1 + $0x8] sm:$0x1] %vm42_vm1, %v45_v24  }
  0x14   :  { %v41_v23 = vsel %vm40_vm0, %v39_v22, %v38_v21 }
  0x15   :  { %43 = vst.msk [vmem:[%s184_s1] sm:$0xff] %vm42_vm1, %v41_v23  }
  0x1a   :  { %61 = vrot.lane.b32.xlu0 %v60_v18, %s115_s0  ;;  %78 = vrot.lane.b32.xlu1 %v77_v19, %s116_s24 }
  0x1b   :  { %95 = vrot.lane.b32.xlu2 %v94_v20, %s117_s25 }
  0x6d   :  { %v90_v25 = vpop.permute.xlu2 %89  }
  0x75   :  { %v96_v26 = vpop.permute.xlu2 %95  }
  0x84   :  { %v56_v27 = vpop.permute.xlu0 %55   ;;  %v73_v28 = vpop.permute.xlu1 %72  }
  0x85   :  { %58 = vst.msk [vmem:[%s184_s1] sm:$0xff] %vm57_vm2, %v56_v27  }
  0x86   :  { %75 = vst.msk [vmem:[%s184_s1] sm:$0xff] %vm74_vm3, %v73_v28  }
  0x87   :  { %92 = vst.msk [vmem:[%s184_s1] sm:$0xff] %vm91_vm4, %v90_v25  }
  0x8c   :  { %v62_v29 = vpop.permute.xlu0 %61   ;;  %v79_v30 = vpop.permute.xlu1 %78  }
  0x8d   :  { %109 = vst.msk [vmem:[%s184_s1 + $0x8] sm:$0x1] %vm57_vm2, %v62_v29  }
  0x8e   :  { %110 = vst.msk [vmem:[%s184_s1 + $0x8] sm:$0x1] %vm74_vm3, %v79_v30  }
  0x8f   :  { %111 = vst.msk [vmem:[%s184_s1 + $0x8] sm:$0x1] %vm91_vm4, %v96_v26  }

// kernel: deform_conv2d_forward.5
= control target key start
LH: loop header
LB: loop body
LE: loop exit
PB: predicated region body
PF: predicated region fallthrough
CT: control target
= control target key end

     0   :  { %s1259_s18 = smov 0   ;;  %s1261_s19 = smov 0   ;;  %s1580_s0 = inlined_call_operand.vmem [shape: bf16[4,36,512], index: 0, kind: input, shape index: {}]   ;;  %s1581_s1 = inlined_call_operand.vmem [shape: f32[4,9,512], index: 1, kind: input, shape index: {}]   ;;  %s1582_s2 = inlined_call_operand.vmem [shape: f32[9,512], index: 2, kind: input, shape index: {}]   ;;  %s1583_s3 = inlined_call_operand.vmem [shape: f32[36,9], index: 3, kind: input, shape index: {}]   ;;  %s1584_s4 = inlined_call_operand.vmem [shape: bf16[8,36], index: 4, kind: input, shape index: {}]   ;;  %s1585_s5 = inlined_call_operand.vmem [shape: f32[8,512], index: 5, kind: output, shape index: {}]  }
   0x1   :  { %s1263_s20 = smov 0  }
   0x2 LB: > { %s1076_s21 = sadd.s32 4294967295, %s1227_s20   ;;  %s1276_s22 = sadd.s32 1, %s1227_s20   ;;  %s1227_s20 = sphi %s1263_s20, %s1589_s20   ;;  %s1223_s19 = sphi %s1261_s19, %s1588_s19   ;;  %s1219_s18 = sphi %s1259_s18, %s1587_s18  }
   0x3   : > { %s19_s23 = ssub.s32 %s1227_s20, %s1276_s22  ;;  %s22_s24 = sadd.s32 1, %s1223_s19 }
   0x4   : > { %p20_p0 = scmp.eq.s32.totalorder %s19_s23, 0  ;;  %p29_p1 = scmp.ne.s32.totalorder %s1223_s19, %s1219_s18 }
   0x5   : > { %p30_p2 = scmp.eq.s32.totalorder %s1227_s20, 0  ;;  %p1079_p4 = scmp.ge.s32.totalorder %s1227_s20, 2 }
   0x6   : > { %s1285_s25 = scalar_select %p20_p0, %s1223_s19, %s22_s24  }
   0x7   : > { %p1287_p3 = por %p30_p2, %p29_p1  ;;  %181 = sbr.rel (%p1079_p4) target bundleno = 64 (0x40), region = 24 }
   0xc   : > { %184 = sbr.rel (!%p1287_p3) target bundleno = 36 (0x24), region = 28  ;;  %s186_s27 = sand.u32 (%p1287_p3), 1, %s1223_s19  }
   0xd   : > { %s1172_s28 = sshll.u32 (%p1287_p3), %s1227_s20, 3  ;;  %s1179_s29 = smul.u32 (%p1287_p3), 160, %s186_s27 }
   0xe   : > { %s1299_s7 = scalar_lea.vmem (%p1287_p3), %s1580_s0, %s1172_s28 }
   0xf   : > { %v258_v0 = vld [vmem:[%s1299_s7] sm:$0xff] (%p1287_p3)  ;;  %v260_v1 = vld [vmem:[%s1299_s7 + $0x10] sm:$0xff] (%p1287_p3)  ;;  %s1304_s8 = scalar_lea.vmem (%p1287_p3), [#allocation2], %s1179_s29 }
  0x10   : > { %v262_v2 = vld [vmem:[%s1299_s7 + $0x20] sm:$0xff] (%p1287_p3)  ;;  %259 = vst [vmem:[%s1304_s8] sm:$0xff] (%p1287_p3), %v258_v0  ;;  %v264_v3 = vld [vmem:[%s1299_s7 + $0x30] sm:$0xff] (%p1287_p3) }
  0x11   : > { %261 = vst [vmem:[%s1304_s8 + $0x8] sm:$0xff] %v260_v1  ;;  %v266_v4 = vld [vmem:[%s1299_s7 + $0x40] sm:$0xff]  ;;  %v268_v5 = vld [vmem:[%s1299_s7 + $0x50] sm:$0xff] }
  0x12   : > { %263 = vst [vmem:[%s1304_s8 + $0x10] sm:$0xff] %v262_v2  ;;  %v270_v6 = vld [vmem:[%s1299_s7 + $0x60] sm:$0xff]  ;;  %v272_v7 = vld [vmem:[%s1299_s7 + $0x70] sm:$0xff] }
  0x13   : > { %265 = vst [vmem:[%s1304_s8 + $0x18] sm:$0xff] %v264_v3  ;;  %v274_v8 = vld [vmem:[%s1299_s7 + $0x80] sm:$0xff]  ;;  %v276_v9 = vld [vmem:[%s1299_s7 + $0x90] sm:$0xff] }
  0x14   : > { %267 = vst [vmem:[%s1304_s8 + $0x20] sm:$0xff] %v266_v4  ;;  %v278_v10 = vld [vmem:[%s1299_s7 + $0xa0] sm:$0xff]  ;;  %v280_v11 = vld [vmem:[%s1299_s7 + $0xb0] sm:$0xff] }
  0x15   : > { %269 = vst [vmem:[%s1304_s8 + $0x28] sm:$0xff] %v268_v5  ;;  %v282_v12 = vld [vmem:[%s1299_s7 + $0xc0] sm:$0xff]  ;;  %v284_v13 = vld [vmem:[%s1299_s7 + $0xd0] sm:$0xff] }
  0x16   : > { %271 = vst [vmem:[%s1304_s8 + $0x30] sm:$0xff] %v270_v6  ;;  %v286_v14 = vld [vmem:[%s1299_s7 + $0xe0] sm:$0xff]  ;;  %v288_v15 = vld [vmem:[%s1299_s7 + $0xf0] sm:$0xff] }
  0x17   : > { %273 = vst [vmem:[%s1304_s8 + $0x38] sm:$0xff] %v272_v7  ;;  %v290_v16 = vld [vmem:[%s1299_s7 + $0x100] sm:$0xff]  ;;  %v292_v17 = vld [vmem:[%s1299_s7 + $0x110] sm:$0xff] }
  0x18   : > { %275 = vst [vmem:[%s1304_s8 + $0x40] sm:$0xff] %v274_v8  ;;  %v294_v18 = vld [vmem:[%s1299_s7 + $0x120] sm:$0xff]  ;;  %v296_v19 = vld [vmem:[%s1299_s7 + $0x130] sm:$0xff] }
  0x19   : > { %277 = vst [vmem:[%s1304_s8 + $0x48] sm:$0xff] %v276_v9 }
  0x1a   : > { %279 = vst [vmem:[%s1304_s8 + $0x50] sm:$0xff] %v278_v10 }
  0x1b   : > { %281 = vst [vmem:[%s1304_s8 + $0x58] sm:$0xff] %v280_v11 }
  0x1c   : > { %283 = vst [vmem:[%s1304_s8 + $0x60] sm:$0xff] %v282_v12 }
  0x1d   : > { %285 = vst [vmem:[%s1304_s8 + $0x68] sm:$0xff] %v284_v13 }
  0x1e   : > { %287 = vst [vmem:[%s1304_s8 + $0x70] sm:$0xff] %v286_v14 }
  0x1f   : > { %289 = vst [vmem:[%s1304_s8 + $0x78] sm:$0xff] %v288_v15 }
  0x20   : > { %291 = vst [vmem:[%s1304_s8 + $0x80] sm:$0xff] %v290_v16 }
  0x21   : > { %293 = vst [vmem:[%s1304_s8 + $0x88] sm:$0xff] %v292_v17 }
  0x22   : > { %295 = vst [vmem:[%s1304_s8 + $0x90] sm:$0xff] %v294_v18 }
  0x23   : > { %297 = vst [vmem:[%s1304_s8 + $0x98] sm:$0xff] %v296_v19 }
  0x24 PF: > { %303 = sbr.rel (!%p1287_p3) target bundleno = 56 (0x38), region = 66  ;;  %s305_s9 = sand.u32 (%p1287_p3), 1, %s1223_s19  }
  0x25   : > { %s1173_s10 = sshll.u32 (%p1287_p3), %s1227_s20, 4  ;;  %s1082_s11 = sshll.u32 (%p1287_p3), %s305_s9, 7 }
  0x26   : > { %s1350_s14 = scalar_lea.vmem (%p1287_p3), %s1581_s1, %s1173_s10  ;;  %s307_s15 = scalar_lea.vmem (%p1287_p3), [#allocation3], %s1082_s11 }
  0x27   : > { %v323_v20 = vld [vmem:[%s1350_s14] sm:$0xff] (%p1287_p3)  ;;  %v325_v21 = vld [vmem:[%s1350_s14 + $0x8] sm:$0xff] (%p1287_p3) }
  0x28   : > { %v327_v22 = vld [vmem:[%s1350_s14 + $0x20] sm:$0xff] (%p1287_p3)  ;;  %324 = vst [vmem:[%s307_s15] sm:$0xff] (%p1287_p3), %v323_v20  ;;  %v329_v23 = vld [vmem:[%s1350_s14 + $0x28] sm:$0xff] (%p1287_p3) }
  0x29   : > { %326 = vst [vmem:[%s307_s15 + $0x8] sm:$0xff] %v325_v21  ;;  %v331_v24 = vld [vmem:[%s1350_s14 + $0x40] sm:$0xff]  ;;  %v333_v25 = vld [vmem:[%s1350_s14 + $0x48] sm:$0xff] }
  0x2a   : > { %328 = vst [vmem:[%s307_s15 + $0x10] sm:$0xff] %v327_v22  ;;  %v335_v26 = vld [vmem:[%s1350_s14 + $0x60] sm:$0xff]  ;;  %v337_v27 = vld [vmem:[%s1350_s14 + $0x68] sm:$0xff] }
  0x2b   : > { %330 = vst [vmem:[%s307_s15 + $0x18] sm:$0xff] %v329_v23  ;;  %v339_v28 = vld [vmem:[%s1350_s14 + $0x80] sm:$0xff]  ;;  %v341_v29 = vld [vmem:[%s1350_s14 + $0x88] sm:$0xff] }
  0x2c   : > { %332 = vst [vmem:[%s307_s15 + $0x20] sm:$0xff] %v331_v24  ;;  %v343_v30 = vld [vmem:[%s1350_s14 + $0xa0] sm:$0xff]  ;;  %v345_v31 = vld [vmem:[%s1350_s14 + $0xa8] sm:$0xff] }
  0x2d   : > { %334 = vst [vmem:[%s307_s15 + $0x28] sm:$0xff] %v333_v25  ;;  %v347_v32 = vld [vmem:[%s1350_s14 + $0xc0] sm:$0xff]  ;;  %v349_v33 = vld [vmem:[%s1350_s14 + $0xc8] sm:$0xff] }
  0x2e   : > { %336 = vst [vmem:[%s307_s15 + $0x30] sm:$0xff] %v335_v26  ;;  %v351_v34 = vld [vmem:[%s1350_s14 + $0xe0] sm:$0xff]  ;;  %v353_v35 = vld [vmem:[%s1350_s14 + $0xe8] sm:$0xff] }
  0x2f   : > { %338 = vst [vmem:[%s307_s15 + $0x38] sm:$0xff] %v337_v27 }
  0x30   : > { %340 = vst [vmem:[%s307_s15 + $0x40] sm:$0xff] %v339_v28 }
  0x31   : > { %342 = vst [vmem:[%s307_s15 + $0x48] sm:$0xff] %v341_v29 }
  0x32   : > { %344 = vst [vmem:[%s307_s15 + $0x50] sm:$0xff] %v343_v30 }
  0x33   : > { %346 = vst [vmem:[%s307_s15 + $0x58] sm:$0xff] %v345_v31 }
  0x34   : > { %348 = vst [vmem:[%s307_s15 + $0x60] sm:$0xff] %v347_v32 }
  0x35   : > { %350 = vst [vmem:[%s307_s15 + $0x68] sm:$0xff] %v349_v33 }
  0x36   : > { %352 = vst [vmem:[%s307_s15 + $0x70] sm:$0xff] %v351_v34 }
  0x37   : > { %354 = vst [vmem:[%s307_s15 + $0x78] sm:$0xff] %v353_v35 }
  0x38 PF: > { %360 = sbr.rel (!%p1287_p3) target bundleno = 64 (0x40), region = 89  ;;  %s362_s16 = sand.u32 (%p1287_p3), 1, %s1223_s19  }
  0x39   : > { %s1174_s17 = sshll.u32 (%p1287_p3), %s1227_s20, 4  ;;  %s1085_s23 = sshll.u32 (%p1287_p3), %s362_s16, 5 }
  0x3a   : > { %s367_s28 = scalar_lea.vmem (%p1287_p3), %s1582_s2, %s1174_s17  ;;  %s364_s29 = scalar_lea.vmem (%p1287_p3), [#allocation4], %s1085_s23 }
  0x3b   : > { %v380_v36 = vld [vmem:[%s367_s28] sm:$0xff] (%p1287_p3)  ;;  %v382_v37 = vld [vmem:[%s367_s28 + $0x8] sm:$0xff] (%p1287_p3) }
  0x3c   : > { %v384_v38 = vld [vmem:[%s367_s28 + $0x20] sm:$0xff] (%p1287_p3)  ;;  %381 = vst [vmem:[%s364_s29] sm:$0xff] (%p1287_p3), %v380_v36  ;;  %v386_v39 = vld [vmem:[%s367_s28 + $0x28] sm:$0xff] (%p1287_p3) }
  0x3d   : > { %383 = vst [vmem:[%s364_s29 + $0x8] sm:$0xff] %v382_v37 }
  0x3e   : > { %385 = vst [vmem:[%s364_s29 + $0x10] sm:$0xff] %v384_v38 }
  0x3f   : > { %387 = vst [vmem:[%s364_s29 + $0x18] sm:$0xff] %v386_v39 }
  0x40 PF: > { %p1088_p5 = scmp.ge.s32.totalorder %s1227_s20, 1  ;;  %p392_p6 = scmp.lt.s32.totalorder %s1227_s20, 3 }
  0x42   : > { %p393_p7 = pnand %p1088_p5, %p392_p6 }
  0x43   : > { %s1378_s26 = sand.u32 (!%p393_p7), 1, %s1219_s18   ;;  %s1091_s29 = sshll.u32 (!%p393_p7), %s1076_s21, 1 }
  0x44   : > { %396 = sbr.rel (%p393_p7) target bundleno = 446 (0x1be), region = 112  ;;  %s1089_s30 = sshll.u32 (!%p393_p7), %s1378_s26, 7 }
  0x45   : > { %s1090_s6 = sshll.u32 (!%p393_p7), %s1378_s26, 5  ;;  %s1382_s7 = scalar_lea.vmem (!%p393_p7), [#allocation3], %s1089_s30 }
  0x46   : > { %s415_s8 = scalar_lea.vmem (!%p393_p7), [#allocation4], %s1090_s6  ;;  %s1180_s23 = smul.u32 (!%p393_p7), 160, %s1378_s26 }
  0x47   : > { %p452_p8 = scmp.lt.s32.totalorder (!%p393_p7), %s1091_s29, 3 }
  0x48   : > { %s1486_s24 = scalar_lea.vmem (!%p393_p7), [#allocation2], %s1180_s23 }
  0x49   : > { %v469_v40 = vld [vmem:[%s1382_s7 + $0x10] sm:$0x1]  ;;  %vm491_vm0 = vcmask 1040384   ;;  %v461_v42 = vld [vmem:[%s415_s8 + $0x18] sm:$0x1]  ;;  %v458_v46 = vld [vmem:[%s415_s8] sm:$0xff] }
  0x4a   : > { %v460_v41 = vld [vmem:[%s415_s8 + $0x10] sm:$0x1]  ;;  %v470_v43 = vld [vmem:[%s1382_s7 + $0x18] sm:$0x1]  ;;  %v467_v47 = vld [vmem:[%s1382_s7] sm:$0xff]  ;;  %vm475_vm1 = vcmask 72704  }
  0x4b   : > { %v473_v44 = vmul.f32 %v469_v40, %v460_v41  ;;  %v474_v45 = vmul.f32 %v470_v43, %v461_v42  ;;  %v471_v48 = vmul.f32 %v467_v47, %v458_v46  ;;  %v459_v49 = vld [vmem:[%s415_s8 + $0x8] sm:$0xff]  ;;  %v1391_v51 = vld [vmem:[%s1583_s3] sm:$0xff]  ;;  %v1107_v52 = vld [vmem:[%s1382_s7 + $0x30] sm:$0x1]  ;;  %vm943_vm2 = vcmask 1041408   ;;  %s1591_s29 = smov (!%p452_p8, %s1091_s29), 3 }
  0x4c   : > { %v468_v50 = vld [vmem:[%s1382_s7 + $0x8] sm:$0xff]  ;;  %v1399_v54 = vld [vmem:[%s1583_s3 + $0x20] sm:$0xf]  ;;  %v1108_v55 = vld [vmem:[%s1382_s7 + $0x38] sm:$0x1]  ;;  %v594_v60 = vmul.f32 %v1107_v52, %v460_v41  ;;  %vm939_vm3 = vcmask 293888  }
  0x4d   : > { %1093 = vmatpush.msk.msra.mxu0 %vm491_vm0, %v473_v44  ;;  %1175 = vmatpush.msk.msra.mxu2 %vm491_vm0, %v473_v44  ;;  %v472_v53 = vmul.f32 %v468_v50, %v459_v49  ;;  %v1105_v56 = vld [vmem:[%s1382_s7 + $0x20] sm:$0xff]  ;;  %v1106_v57 = vld [vmem:[%s1382_s7 + $0x28] sm:$0xff]  ;;  %v1128_v58 = vld [vmem:[%s1382_s7 + $0x50] sm:$0x1]  ;;  %v595_v61 = vmul.f32 %v1108_v55, %v461_v42  ;;  %s1092_s26 = sshll.u32 %s1591_s29, 3 }
  0x4e   : > { %1099 = vmatpush.msk.msra.mxu1 %vm491_vm0, %v474_v45  ;;  %1177 = vmatpush.msk.msra.mxu3 %vm491_vm0, %v474_v45  ;;  %v1129_v59 = vld [vmem:[%s1382_s7 + $0x58] sm:$0x1]  ;;  %v1126_v62 = vld [vmem:[%s1382_s7 + $0x40] sm:$0xff]  ;;  %v1127_v63 = vld [vmem:[%s1382_s7 + $0x48] sm:$0xff]  ;;  %v709_v2 = vmul.f32 %v1128_v58, %v460_v41  ;;  %v592_v4 = vmul.f32 %v1105_v56, %v458_v46  ;;  %v593_v5 = vmul.f32 %v1106_v57, %v459_v49 }
  0x4f   : > { %513 = vmatpush.msra.mxu0 %v471_v48  ;;  %1176 = vmatpush.msra.mxu2 %v471_v48  ;;  %v1149_v0 = vld [vmem:[%s1382_s7 + $0x70] sm:$0x1]  ;;  %v1150_v1 = vld [vmem:[%s1382_s7 + $0x78] sm:$0x1]  ;;  %v710_v3 = vmul.f32 %v1129_v59, %v461_v42  ;;  %v707_v6 = vmul.f32 %v1126_v62, %v458_v46  ;;  %v708_v7 = vmul.f32 %v1127_v63, %v459_v49  ;;  %v463_v10 = vld [vmem:[%s1583_s3 + $0x8] sm:$0xff] }
  0x50   : > { %545 = vmatpush.msra.mxu1 %v472_v53  ;;  %1178 = vmatpush.msra.mxu3 %v472_v53  ;;  %v824_v8 = vmul.f32 %v1149_v0, %v460_v41  ;;  %v825_v9 = vmul.f32 %v1150_v1, %v461_v42  ;;  %v1147_v11 = vld [vmem:[%s1382_s7 + $0x60] sm:$0xff]  ;;  %v1148_v12 = vld [vmem:[%s1382_s7 + $0x68] sm:$0xff]  ;;  %v464_v15 = vld [vmem:[%s1583_s3 + $0x10] sm:$0xff]  ;;  %s455_s7 = scalar_lea.vmem %s1585_s5, %s1092_s26 }
  0x51   : > { %1094 = vmatmul.msk.f32.vlgmr.msra.gmra.mxu0 %vm475_vm1, %v1391_v51  ;;  %1098 = vmatmul.msk.f32.vlgmr.msra.gmra.mxu2 %vm475_vm1, %v1399_v54  ;;  %v822_v13 = vmul.f32 %v1147_v11, %v458_v46  ;;  %v823_v14 = vmul.f32 %v1148_v12, %v459_v49  ;;  %v465_v16 = vld [vmem:[%s1583_s3 + $0x18] sm:$0xff]  ;;  %v562_v17 = vld [vmem:[%s1486_s24] sm:$0xff]  ;;  %v1121_v32 = vld [vmem:[%s1486_s24 + $0x28] sm:$0xff] }
  0x52   : > { %1100 = vmatmul.msk.f32.vlgmr.msra.gmra.mxu1 %vm475_vm1, %v1391_v51  ;;  %1104 = vmatmul.msk.f32.vlgmr.msra.gmra.mxu3 %vm475_vm1, %v1399_v54  ;;  %v567_v18 = vunpack.c.l.bf16 %v562_v17  ;;  %v568_v19 = vunpack.c.h.bf16 %v562_v17  ;;  %v566_v21 = vld [vmem:[%s1486_s24 + $0x20] sm:$0x33]  ;;  %v672_v34 = vunpack.c.l.bf16 %v1121_v32  ;;  %v673_v35 = vunpack.c.h.bf16 %v1121_v32  ;;  %v563_v36 = vld [vmem:[%s1486_s24 + $0x8] sm:$0xff]  ;;  %v1122_v42 = vld [vmem:[%s1486_s24 + $0x30] sm:$0xff] }
  0x53   : > { %1109 = vmatpush.msk.msrb.mxu2 %vm491_vm0, %v594_v60  ;;  %1115 = vmatpush.msk.msrb.mxu3 %vm491_vm0, %v595_v61  ;;  %v575_v25 = vunpack.c.l.bf16 %v566_v21  ;;  %v576_v26 = vunpack.c.h.bf16 %v566_v21  ;;  %v569_v43 = vunpack.c.l.bf16 %v563_v36  ;;  %v570_v46 = vunpack.c.h.bf16 %v563_v36  ;;  %v1142_v60 = vld [vmem:[%s1486_s24 + $0x50] sm:$0xff] }
  0x54   : > { %1130 = vmatpush.msk.msrb.mxu0 %vm491_vm0, %v709_v2  ;;  %1136 = vmatpush.msk.msrb.mxu1 %vm491_vm0, %v710_v3  ;;  %v674_v48 = vunpack.c.l.bf16 %v1122_v42  ;;  %v675_v49 = vunpack.c.h.bf16 %v1122_v42  ;;  %v787_v61 = vunpack.c.l.bf16 %v1142_v60  ;;  %v788_v63 = vunpack.c.h.bf16 %v1142_v60 }
  0x55   : > { %617 = vmatpush.msrb.mxu2 %v592_v4  ;;  %649 = vmatpush.msrb.mxu3 %v593_v5  ;;  %v1143_v5 = vld [vmem:[%s1486_s24 + $0x58] sm:$0xff] }
  0x56   : > { %732 = vmatpush.msrb.mxu0 %v707_v6  ;;  %764 = vmatpush.msrb.mxu1 %v708_v7 }
  0x57   : > { %1151 = vmatpush.msk.msra.mxu2 %vm491_vm0, %v824_v8  ;;  %1157 = vmatpush.msk.msra.mxu3 %vm491_vm0, %v825_v9  ;;  %v789_v8 = vunpack.c.l.bf16 %v1143_v5 }
  0x59   : > { %1095 = vmatmul.msk.f32.gmra.mxu0 %vm475_vm1, %v463_v10  ;;  %1110 = vmatmul.msk.f32.vlgmr.msrb.gmra.mxu2 %vm475_vm1, %v1391_v51 }
  0x5a   : > { %1101 = vmatmul.msk.f32.gmra.mxu1 %vm475_vm1, %v463_v10  ;;  %1116 = vmatmul.msk.f32.vlgmr.msrb.gmra.mxu3 %vm475_vm1, %v1391_v51 }
  0x5b   : > { %847 = vmatpush.msra.mxu2 %v822_v13  ;;  %879 = vmatpush.msra.mxu3 %v823_v14  ;;  %v1125_v13 = vld [vmem:[%s1486_s24 + $0x48] sm:$0x33] }
  0x61   : > { %1096 = vmatmul.msk.f32.gmra.mxu0 %vm475_vm1, %v464_v15  ;;  %1111 = vmatmul.msk.f32.gmra.mxu2 %vm475_vm1, %v463_v10 }
  0x62   : > { %1102 = vmatmul.msk.f32.gmra.mxu1 %vm475_vm1, %v464_v15  ;;  %1117 = vmatmul.msk.f32.gmra.mxu3 %vm475_vm1, %v463_v10 }
  0x69   : > { %1097 = vmatmul.msk.f32.gmra.mxu0 %vm475_vm1, %v465_v16  ;;  %1112 = vmatmul.msk.f32.gmra.mxu2 %vm475_vm1, %v464_v15 }
  0x6a   : > { %1103 = vmatmul.msk.f32.gmra.mxu1 %vm475_vm1, %v465_v16  ;;  %1118 = vmatmul.msk.f32.gmra.mxu3 %vm475_vm1, %v464_v15 }
  0x71   : > { %1113 = vmatmul.msk.f32.gmra.mxu2 %vm475_vm1, %v465_v16  ;;  %1131 = vmatmul.msk.f32.vlgmr.msrb.gmra.mxu0 %vm475_vm1, %v1391_v51 }
  0x72   : > { %1119 = vmatmul.msk.f32.gmra.mxu3 %vm475_vm1, %v465_v16  ;;  %1137 = vmatmul.msk.f32.vlgmr.msrb.gmra.mxu1 %vm475_vm1, %v1391_v51 }
  0x79   : > { %1114 = vmatmul.msk.f32.gmra.mxu2 %vm475_vm1, %v1399_v54  ;;  %1132 = vmatmul.msk.f32.gmra.mxu0 %vm475_vm1, %v463_v10 }
  0x7a   : > { %1120 = vmatmul.msk.f32.gmra.mxu3 %vm475_vm1, %v1399_v54  ;;  %1138 = vmatmul.msk.f32.gmra.mxu1 %vm475_vm1, %v463_v10 }
  0x81   : > { %1133 = vmatmul.msk.f32.gmra.mxu0 %vm475_vm1, %v464_v15  ;;  %1152 = vmatmul.msk.f32.vlgmr.msra.gmra.mxu2 %vm475_vm1, %v1391_v51 }
  0x82   : > { %1139 = vmatmul.msk.f32.gmra.mxu1 %vm475_vm1, %v464_v15  ;;  %1158 = vmatmul.msk.f32.vlgmr.msra.gmra.mxu3 %vm475_vm1, %v1391_v51 }
  0x89   : > { %1134 = vmatmul.msk.f32.gmra.mxu0 %vm475_vm1, %v465_v16  ;;  %1153 = vmatmul.msk.f32.gmra.mxu2 %vm475_vm1, %v463_v10 }
  0x8a   : > { %1140 = vmatmul.msk.f32.gmra.mxu1 %vm475_vm1, %v465_v16  ;;  %1159 = vmatmul.msk.f32.gmra.mxu3 %vm475_vm1, %v463_v10  ;;  %v790_v10 = vunpack.c.h.bf16 %v1143_v5  ;;  %v1123_v5 = vld [vmem:[%s1486_s24 + $0x38] sm:$0xff] }
  0x91   : > { %1135 = vmatmul.msk.f32.gmra.mxu0 %vm475_vm1, %v1399_v54  ;;  %1154 = vmatmul.msk.f32.gmra.mxu2 %vm475_vm1, %v464_v15 }
  0x92   : > { %1141 = vmatmul.msk.f32.gmra.mxu1 %vm475_vm1, %v1399_v54  ;;  %1160 = vmatmul.msk.f32.gmra.mxu3 %vm475_vm1, %v464_v15 }
  0x99   : > { %1155 = vmatmul.msk.f32.gmra.mxu2 %vm475_vm1, %v465_v16 }
  0x9a   : > { %1161 = vmatmul.msk.f32.gmra.mxu3 %vm475_vm1, %v465_v16 }
  0xa1   : > { %1156 = vmatmul.msk.f32.gmra.mxu2 %vm475_vm1, %v1399_v54 }
  0xa2   : > { %1162 = vmatmul.msk.f32.gmra.mxu3 %vm475_vm1, %v1399_v54 }
  0xce   : > { %v515_v20 = vpop.f32.mrf.mxu0 }
  0xcf   : > { %v577_v22 = vmul.f32 %v567_v18, %v515_v20  ;;  %v547_v23 = vpop.f32.mrf.mxu1  ;;  %v680_v18 = vunpack.c.l.bf16 %v1125_v13  ;;  %v681_v20 = vunpack.c.h.bf16 %v1125_v13  ;;  %v1144_v13 = vld [vmem:[%s1486_s24 + $0x60] sm:$0xff] }
  0xd0   : > { %v578_v24 = vmul.f32 %v568_v19, %v547_v23 }
  0xd4   : > { %v527_v27 = vpop.f32.mrf.mxu2 }
  0xd5   : > { %v1490_v28 = vmul.f32 %v575_v25, %v527_v27  ;;  %v559_v29 = vpop.f32.mrf.mxu3 }
  0xd6   : > { %v1492_v30 = vmul.f32 %v576_v26, %v559_v29  ;;  %v518_v31 = vpop.f32.mrf.mxu0  ;;  %v1163_v26 = vld [vmem:[%s1486_s24 + $0x78] sm:$0xff] }
  0xd7   : > { %v550_v33 = vpop.f32.mrf.mxu1  ;;  %v579_v50 = vmul.f32 %v569_v43, %v518_v31  ;;  %v902_v32 = vunpack.c.l.bf16 %v1163_v26 }
  0xd8   : > { %v580_v51 = vmul.f32 %v570_v46, %v550_v33  ;;  %v903_v33 = vunpack.c.h.bf16 %v1163_v26 }
  0xdc   : > { %v619_v37 = vpop.f32.mrf.mxu2 }
  0xdd   : > { %v682_v38 = vmul.f32 %v672_v34, %v619_v37  ;;  %v651_v39 = vpop.f32.mrf.mxu3 }
  0xde   : > { %v683_v40 = vmul.f32 %v673_v35, %v651_v39  ;;  %v1496_v41 = vpop.f32.mrf.mxu0  ;;  %v1164_v39 = vld [vmem:[%s1486_s24 + $0x80] sm:$0xff] }
  0xdf   : > { %v692_v44 = vadd.f32 %v682_v38, %v577_v22  ;;  %v1499_v45 = vpop.f32.mrf.mxu1  ;;  %v904_v46 = vunpack.c.l.bf16 %v1164_v39 }
  0xe0   : > { %v693_v47 = vadd.f32 %v683_v40, %v578_v24 }
  0xe4   : > { %v622_v52 = vpop.f32.mrf.mxu2 }
  0xe5   : > { %v684_v53 = vmul.f32 %v674_v48, %v622_v52  ;;  %v654_v54 = vpop.f32.mrf.mxu3 }
  0xe6   : > { %v685_v55 = vmul.f32 %v675_v49, %v654_v54  ;;  %v1501_v56 = vpop.f32.mrf.mxu0 }
  0xe7   : > { %v694_v57 = vadd.f32 %v684_v53, %v579_v50  ;;  %v1503_v58 = vpop.f32.mrf.mxu1 }
  0xe8   : > { %v695_v59 = vadd.f32 %v685_v55, %v580_v51 }
  0xec   : > { %v1506_v62 = vpop.f32.mrf.mxu2 }
  0xed   : > { %v1508_v0 = vpop.f32.mrf.mxu3 }
  0xee   : > { %v734_v1 = vpop.f32.mrf.mxu0 }
  0xef   : > { %v797_v2 = vmul.f32 %v787_v61, %v734_v1  ;;  %v766_v3 = vpop.f32.mrf.mxu1 }
  0xf0   : > { %v798_v4 = vmul.f32 %v788_v63, %v766_v3 }
  0xf1   : > { %v807_v6 = vadd.f32 %v797_v2, %v692_v44  ;;  %v1146_v44 = vld [vmem:[%s1486_s24 + $0x70] sm:$0x33] }
  0xf2   : > { %v808_v7 = vadd.f32 %v798_v4, %v693_v47  ;;  %v795_v47 = vunpack.c.l.bf16 %v1146_v44  ;;  %v796_v49 = vunpack.c.h.bf16 %v1146_v44  ;;  %v564_v4 = vld [vmem:[%s1486_s24 + $0x10] sm:$0xff] }
  0xf4   : > { %v1511_v9 = vpop.f32.mrf.mxu2 }
  0xf5   : > { %v1513_v11 = vpop.f32.mrf.mxu3 }
  0xf6   : > { %v737_v12 = vpop.f32.mrf.mxu0 }
  0xf7   : > { %v799_v14 = vmul.f32 %v789_v8, %v737_v12  ;;  %v769_v15 = vpop.f32.mrf.mxu1  ;;  %v676_v12 = vunpack.c.l.bf16 %v1123_v5 }
  0xf8   : > { %v800_v16 = vmul.f32 %v790_v10, %v769_v15  ;;  %v571_v10 = vunpack.c.l.bf16 %v564_v4 }
  0xf9   : > { %v809_v17 = vadd.f32 %v799_v14, %v694_v57  ;;  %v1145_v14 = vld [vmem:[%s1486_s24 + $0x68] sm:$0xff] }
  0xfa   : > { %v810_v19 = vadd.f32 %v800_v16, %v695_v59  ;;  %v793_v26 = vunpack.c.l.bf16 %v1145_v14 }
  0xfc   : > { %v631_v21 = vpop.f32.mrf.mxu2 }
  0xfd   : > { %v690_v22 = vmul.f32 %v680_v18, %v631_v21  ;;  %v663_v23 = vpop.f32.mrf.mxu3  ;;  %v1167_v18 = vld [vmem:[%s1486_s24 + $0x98] sm:$0x33]  ;;  %v1166_v21 = vld [vmem:[%s1486_s24 + $0x90] sm:$0xff] }
  0xfe   : > { %v691_v24 = vmul.f32 %v681_v20, %v663_v23  ;;  %v1516_v25 = vpop.f32.mrf.mxu0  ;;  %v677_v23 = vunpack.c.h.bf16 %v1123_v5 }
  0xff   : > { %v700_v27 = vadd.f32 %v690_v22, %v1490_v28  ;;  %v1520_v29 = vpop.f32.mrf.mxu1  ;;  %v905_v28 = vunpack.c.h.bf16 %v1164_v39  ;;  %v572_v22 = vunpack.c.h.bf16 %v564_v4  ;;  %v911_v39 = vunpack.c.h.bf16 %v1167_v18 }
 0x100   : > { %v701_v31 = vadd.f32 %v691_v24, %v1492_v30  ;;  %v791_v24 = vunpack.c.l.bf16 %v1144_v13 }
 0x104   : > { %v849_v34 = vpop.f32.mrf.mxu2 }
 0x105   : > { %v912_v35 = vmul.f32 %v902_v32, %v849_v34  ;;  %v881_v36 = vpop.f32.mrf.mxu3  ;;  %v794_v32 = vunpack.c.h.bf16 %v1145_v14  ;;  %v910_v34 = vunpack.c.l.bf16 %v1167_v18 }
 0x106   : > { %v913_v37 = vmul.f32 %v903_v33, %v881_v36  ;;  %v743_v38 = vpop.f32.mrf.mxu0  ;;  %v1165_v33 = vld [vmem:[%s1486_s24 + $0x88] sm:$0xff] }
 0x107   : > { %v1524_v40 = vadd.f32 %v912_v35, %v807_v6  ;;  %v775_v42 = vpop.f32.mrf.mxu1  ;;  %v565_v6 = vld [vmem:[%s1486_s24 + $0x18] sm:$0xff] }
 0x108   : > { %v1526_v43 = vadd.f32 %v913_v37, %v808_v7  ;;  %v1124_v7 = vld [vmem:[%s1486_s24 + $0x40] sm:$0xff]  ;;  %v573_v16 = vunpack.c.l.bf16 %v565_v6  ;;  %v908_v37 = vunpack.c.l.bf16 %v1166_v21 }
 0x109   : > { %v679_v20 = vunpack.c.h.bf16 %v1124_v7 }
 0x10a   : > { %v583_v35 = vmul.f32 %v573_v16, %v1501_v56  ;;  %v907_v56 = vunpack.c.h.bf16 %v1165_v33 }
 0x10c   : > { %v852_v48 = vpop.f32.mrf.mxu2 }
 0x10d   : > { %v914_v30 = vmul.f32 %v904_v46, %v852_v48  ;;  %v884_v50 = vpop.f32.mrf.mxu3  ;;  %v689_v46 = vmul.f32 %v679_v20, %v1513_v11  ;;  %v582_v48 = vmul.f32 %v572_v22, %v1499_v45 }
 0x10e   : > { %v915_v51 = vmul.f32 %v905_v28, %v884_v50  ;;  %v746_v52 = vpop.f32.mrf.mxu0  ;;  %v792_v28 = vunpack.c.h.bf16 %v1144_v13 }
 0x10f   : > { %v1529_v53 = vadd.f32 %v914_v30, %v809_v17  ;;  %v805_v54 = vmul.f32 %v795_v47, %v746_v52  ;;  %v778_v55 = vpop.f32.mrf.mxu1  ;;  %v678_v17 = vunpack.c.l.bf16 %v1124_v7  ;;  %v909_v47 = vunpack.c.h.bf16 %v1166_v21 }
 0x110   : > { %v1531_v57 = vadd.f32 %v915_v51, %v810_v19  ;;  %v806_v59 = vmul.f32 %v796_v49, %v778_v55  ;;  %v574_v19 = vunpack.c.h.bf16 %v565_v6  ;;  %v906_v49 = vunpack.c.l.bf16 %v1165_v33 }
 0x111   : > { %v815_v60 = vadd.f32 %v805_v54, %v700_v27  ;;  %v933_v61 = vpack.c.bf16 %v1529_v53, %v1524_v40  ;;  %v581_v27 = vmul.f32 %v571_v10, %v1496_v41  ;;  %v688_v36 = vmul.f32 %v678_v17, %v1511_v9 }
 0x112   : > { %v816_v63 = vadd.f32 %v806_v59, %v701_v31  ;;  %v934_v1 = vpack.c.bf16 %v1531_v57, %v1526_v43  ;;  %v686_v31 = vmul.f32 %v676_v12, %v1506_v62  ;;  %v584_v44 = vmul.f32 %v574_v19, %v1503_v58 }
 0x113   : > { %v687_v41 = vmul.f32 %v677_v23, %v1508_v0  ;;  %v803_v62 = vmul.f32 %v793_v26, %v743_v38  ;;  %v804_v51 = vmul.f32 %v794_v32, %v775_v42  ;;  %v698_v54 = vadd.f32 %v688_v36, %v583_v35 }
 0x114   : > { %v855_v2 = vpop.f32.mrf.mxu2  ;;  %v696_v50 = vadd.f32 %v686_v31, %v581_v27  ;;  %v801_v55 = vmul.f32 %v791_v24, %v1516_v25  ;;  %v699_v11 = vadd.f32 %v689_v46, %v584_v44  ;;  %v802_v4 = vmul.f32 %v792_v28, %v1520_v29 }
 0x115   : > { %v887_v3 = vpop.f32.mrf.mxu3  ;;  %v813_v6 = vadd.f32 %v803_v62, %v698_v54  ;;  %v916_v0 = vmul.f32 %v906_v49, %v855_v2  ;;  %v697_v7 = vadd.f32 %v687_v41, %v582_v48 }
 0x116   : > { %v814_v10 = vadd.f32 %v804_v51, %v699_v11  ;;  %v917_v42 = vmul.f32 %v907_v56, %v887_v3  ;;  %v811_v13 = vadd.f32 %v801_v55, %v696_v50 }
 0x117   : > { %v812_v17 = vadd.f32 %v802_v4, %v697_v7 }
 0x118   : > { %v926_v18 = vadd.f32 %v916_v0, %v811_v13 }
 0x11c   : > { %v858_v8 = vpop.f32.mrf.mxu2 }
 0x11d   : > { %v890_v15 = vpop.f32.mrf.mxu3  ;;  %v918_v58 = vmul.f32 %v908_v37, %v858_v8 }
 0x11e   : > { %v919_v5 = vmul.f32 %v909_v47, %v890_v15  ;;  %v927_v15 = vadd.f32 %v917_v42, %v812_v17 }
 0x11f   : > { %v928_v14 = vadd.f32 %v918_v58, %v813_v6 }
 0x120   : > { %v929_v25 = vadd.f32 %v919_v5, %v814_v10 }
 0x122   : > { %v936_v2 = vpack.c.bf16 %v929_v25, %v927_v15 }
 0x124   : > { %v861_v30 = vpop.f32.mrf.mxu2 }
 0x125   : > { %v920_v52 = vmul.f32 %v910_v34, %v861_v30  ;;  %v893_v9 = vpop.f32.mrf.mxu3 }
 0x126   : > { %v921_v59 = vmul.f32 %v911_v39, %v893_v9 }
 0x127   : > { %v930_v45 = vadd.f32 %v920_v52, %v815_v60  ;;  %v935_v60 = vpack.c.bf16 %v928_v14, %v926_v18 }
 0x128   : > { %v931_v38 = vadd.f32 %v921_v59, %v816_v63  ;;  %v932_v63 = vld [vmem:[%s1584_s4] sm:$0xf] }
 0x129   : > { %v937_v12 = vpack.c.bf16 %v930_v45, %v930_v45 }
 0x12a   : > { %v938_v16 = vpack.c.bf16 %v931_v38, %v931_v38 }
 0x12b   : > { %v945_v8 = vsel %vm943_vm2, %v937_v12, 0 }
 0x12c   : > { %955 = vmatpush.bf16.msra.mxu0 %v945_v8  ;;  %v948_v29 = vsel %vm943_vm2, %v938_v16, 0 }
 0x12d   : > { %968 = vmatpush.bf16.msra.mxu1 %v948_v29 }
 0x130   : > { %956 = vmatpush.bf16.msra.mxu0 %v935_v60 }
 0x131   : > { %969 = vmatpush.bf16.msra.mxu1 %v936_v2 }
 0x134   : > { %957 = vmatpush.bf16.msra.mxu0 %v933_v61 }
 0x135   : > { %970 = vmatpush.bf16.msra.mxu1 %v934_v1 }
 0x137   : > { %1168 = vmatmul.msk.bf16.vlgmr.msra.gmra.mxu0 %vm939_vm3, %v932_v63 }
 0x138   : > { %1169 = vmatmul.msk.bf16.vlgmr.msra.gmra.mxu1 %vm939_vm3, %v932_v63 }
 0x1b4   : > { %v959_v40 = vpop.f32.mrf.mxu0 }
 0x1b5   : > { %976 = vst [vmem:[%s455_s7] sm:$0xff] %v959_v40  ;;  %v972_v53 = vpop.f32.mrf.mxu1 }
 0x1b6   : > { %977 = vst [vmem:[%s455_s7 + $0x8] sm:$0xff] %v972_v53 }
 0x1bc   : > { %v961_v61 = vpop.f32.mrf.mxu0 }
 0x1bd   : > { %v974_v3 = vpop.f32.mrf.mxu1 }
 0x1be PF: > { %p12_p9 = scmp.ge.s32.totalorder %s1276_s22, 4   ;;  %s1587_s18 = smov %s1223_s19 }
 0x1bf   : > { %s1588_s19 = smov %s1285_s25  ;;  %s1589_s20 = smov %s1276_s22 }
 0x1c0   :  { %14 = sbr.rel (!%p12_p9) target bundleno = 2 (0x2), region = 181 }

</bundles_post_ra>
